<compile_context>
chip_gen: v6e
topology: v6e:2x2x1
jax: 0.10.0
libtpu: 0.0.40
codegen_flags: <defaults>
</compile_context>

<pallas_src>
import jax
import jax.numpy as jnp
from jax.experimental import pallas as pl
from jax.experimental.pallas import tpu as pltpu

F_IN, H1, H2, OUT = 2310, 256, 32, 1
BN_EPS = 1e-5
DEFAULT_TILE_B = 1024                 # rows per grid step (f32 x tile ~9.5 MB, dbl-buffered)
VMEM_LIMIT_BYTES = 48 * 1024 * 1024   # explicit scoped-VMEM cap; < v7x 64 MiB physical


def sbernet_kernel(x_ref, w1_ref, b1_ref, w2_ref, b2_ref, wc_ref, bc_ref, o_ref):
    # fc1 (+ folded bn0/bn1): (TB, 2310) @ (2310, 256) on the MXU, f32 accumulation.
    # x arrives in its HBM dtype (f32 or bf16) and is cast on-chip (no extra HBM pass).
    x = x_ref[...].astype(jnp.bfloat16)
    h = jnp.dot(x, w1_ref[...], preferred_element_type=jnp.float32)
    h = jnp.maximum(h + b1_ref[...], 0.0).astype(jnp.bfloat16)

    # fc2 (+ folded bn2): (TB, 256) @ (256, 32), f32 accumulation.
    h = jnp.dot(h, w2_ref[...], preferred_element_type=jnp.float32)
    h = jnp.maximum(h + b2_ref[...], 0.0)

    # classifier (32 -> 1): VPU broadcast-multiply + lane reduction (N=1 would waste the
    # MXU).  Emit the result as a lane-dense (1, TB) row so the HBM writeback is full
    # vst's instead of masked last-dim-1 partial stores.
    logits = jnp.sum(h * wc_ref[...], axis=-1, keepdims=True) + bc_ref[...]   # (TB, 1)
    o_ref[...] = logits.T                                                     # (1, TB)


def _fold_params(params):
    """Fold bn0/bn1/bn2 (eval mode) into fc1/fc2; cast weights for the kernel."""

    def bn_scale_shift(gamma, beta, mean, var, eps=BN_EPS):
        scale = gamma / jnp.sqrt(var + eps)
        shift = beta - mean * scale
        return scale, shift

    s0, sh0 = bn_scale_shift(*params["bn0"])
    s1, sh1 = bn_scale_shift(*params["bn1"])
    s2, sh2 = bn_scale_shift(*params["bn2"])

    w1 = params["fc1_w"].T            # (2310, 256)
    b1 = params["fc1_b"]              # (256,)
    w2 = params["fc2_w"].T            # (256, 32)
    b2 = params["fc2_b"]              # (32,)
    wc = params["cls_w"]              # (1, 32)  (PyTorch (out, in))
    bc = params["cls_b"]              # (1,)

    # bn0 into fc1 input side:  (x*s0 + sh0) @ W1 + b1 = x @ (s0[:,None]*W1) + (sh0@W1 + b1)
    b1f = b1 + sh0 @ w1
    w1f = w1 * s0[:, None]
    # bn1 into fc1 output side: y*s1 + sh1
    w1f = w1f * s1[None, :]
    b1f = b1f * s1 + sh1
    # bn2 into fc2 output side
    w2f = w2 * s2[None, :]
    b2f = b2 * s2 + sh2

    return (
        w1f.astype(jnp.bfloat16),               # (2310, 256)
        b1f.reshape(1, H1).astype(jnp.float32),
        w2f.astype(jnp.bfloat16),               # (256, 32)
        b2f.reshape(1, H2).astype(jnp.float32),
        wc.reshape(1, H2).astype(jnp.float32),
        bc.reshape(1, OUT).astype(jnp.float32),
    )


def _round_up(n, m):
    return ((n + m - 1) // m) * m


def _choose_tile_b(batch):
    # >=2 grid steps when the batch allows it (megacore on v7x), rows a multiple of 8
    # (sublane alignment), capped by the VMEM-sized DEFAULT_TILE_B.
    return max(8, min(DEFAULT_TILE_B, _round_up(pl.cdiv(batch, 2), 8)))


def sbernet_forward(x, params, tile_b=None):
    B = x.shape[0]
    assert x.shape[1] == F_IN
    w1, b1, w2, b2, wc, bc = _fold_params(params)

    if tile_b is None:
        tile_b = _choose_tile_b(B)

    # Feed x straight to the kernel (no pad/cast materialisation in HBM).
    if B % 8 == 0:
        x_in, rows = x, B           # remainder (if any) handled by Pallas boundary blocks
    elif B <= tile_b:
        x_in, rows, tile_b = x, B, B   # single full-array block: no alignment constraint
    else:
        rows = _round_up(B, 8)         # rare: large, non-8-aligned batch -> pad rows once
        x_in = jnp.zeros((rows, F_IN), x.dtype).at[:B].set(x)

    n_tiles = pl.cdiv(rows, tile_b)

    flops = 2 * rows * (F_IN * H1 + H1 * H2 + H2 * OUT)
    bytes_accessed = (
        x_in.size * x_in.dtype.itemsize
        + w1.size * 2 + w2.size * 2
        + (b1.size + b2.size + wc.size + bc.size) * 4
        + n_tiles * tile_b * 4
    )

    out = pl.pallas_call(
        sbernet_kernel,
        out_shape=jax.ShapeDtypeStruct((n_tiles, tile_b), jnp.float32),
        grid=(n_tiles,),
        in_specs=[
            pl.BlockSpec((tile_b, F_IN), lambda i: (i, 0)),   # x: batch-tiled, streamed
            pl.BlockSpec((F_IN, H1), lambda i: (0, 0)),       # W1: fetched once, VMEM-resident
            pl.BlockSpec((1, H1), lambda i: (0, 0)),          # b1
            pl.BlockSpec((H1, H2), lambda i: (0, 0)),         # W2
            pl.BlockSpec((1, H2), lambda i: (0, 0)),          # b2
            pl.BlockSpec((1, H2), lambda i: (0, 0)),          # classifier weight row
            pl.BlockSpec((1, OUT), lambda i: (0, 0)),         # classifier bias
        ],
        out_specs=pl.BlockSpec((1, tile_b), lambda i: (i, 0)),  # lane-dense output rows
        compiler_params=pltpu.CompilerParams(
            dimension_semantics=("parallel",),
            vmem_limit_bytes=VMEM_LIMIT_BYTES,
        ),
        cost_estimate=pl.CostEstimate(
            flops=flops, transcendentals=0, bytes_accessed=bytes_accessed),
    )(x_in, w1, b1, w2, b2, wc, bc)

    # (n_tiles, tile_b) row-major == batch order; drop padded/OOB rows.
    return out.reshape(n_tiles * tile_b, 1)[:B]


def init_params(key):
    ks = jax.random.split(key, 16)

    def bn(k, n):
        kg, kb, km, kv = jax.random.split(k, 4)
        gamma = 1.0 + 0.1 * jax.random.normal(kg, (n,), jnp.float32)
        beta = 0.1 * jax.random.normal(kb, (n,), jnp.float32)
        rmean = 0.05 * jax.random.normal(km, (n,), jnp.float32)
        rvar = 1.0 + 0.1 * jax.random.uniform(kv, (n,), jnp.float32)
        return (gamma, beta, rmean, rvar)

    def linear(kw, kb, n_in, n_out):
        bound = 1.0 / jnp.sqrt(n_in)
        w = jax.random.uniform(kw, (n_out, n_in), jnp.float32, -bound, bound)
        b = jax.random.uniform(kb, (n_out,), jnp.float32, -bound, bound)
        return w, b

    fc1_w, fc1_b = linear(ks[0], ks[1], F_IN, H1)
    fc2_w, fc2_b = linear(ks[2], ks[3], H1, H2)
    cls_w, cls_b = linear(ks[4], ks[5], H2, OUT)
    return {
        "bn0": bn(ks[6], F_IN),
        "bn1": bn(ks[7], H1),
        "bn2": bn(ks[8], H2),
        "fc1_w": fc1_w, "fc1_b": fc1_b,
        "fc2_w": fc2_w, "fc2_b": fc2_b,
        "cls_w": cls_w, "cls_b": cls_b,
    }


def reference_forward(x, params):
    def bn_apply(h, p):
        g, b, m, v = p
        return (h - m) / jnp.sqrt(v + BN_EPS) * g + b

    h = bn_apply(x, params["bn0"])
    h = h @ params["fc1_w"].T + params["fc1_b"]
    h = jnp.maximum(bn_apply(h, params["bn1"]), 0.0)
    h = h @ params["fc2_w"].T + params["fc2_b"]
    h = jnp.maximum(bn_apply(h, params["bn2"]), 0.0)
    return h @ params["cls_w"].T + params["cls_b"]


if __name__ == "__main__":
    key = jax.random.PRNGKey(0)
    kx, kp = jax.random.split(key)
    params = init_params(kp)

    # B=8: single full tile.  B=24: two grid steps with a partial boundary block
    # (exercises the no-copy remainder handling and the multi-step pipeline).
    for B in (8, 24):
        x = jax.random.normal(jax.random.fold_in(kx, B), (B, F_IN), jnp.float32)
        out = jax.block_until_ready(sbernet_forward(x, params))
        ref = jax.block_until_ready(reference_forward(x, params))
        assert out.shape == (B, OUT)
        # bf16 inputs/weights with f32 accumulation -> slightly looser tolerance
        # than the pure-f32 reference.
        assert jnp.allclose(out, ref, atol=5e-2, rtol=5e-2), (B, out, ref)

    print("KERNEL_OK")
</pallas_src>

<mosaic_0001>
module attributes {stable_mosaic.version = 11 : i64} {
  func.func @sbernet_kernel(%arg0: i32, %arg1: memref<8x2310xf32, #tpu.memory_space<vmem>>, %arg2: memref<2310x256xbf16, #tpu.memory_space<vmem>>, %arg3: memref<1x256xf32, #tpu.memory_space<vmem>>, %arg4: memref<256x32xbf16, #tpu.memory_space<vmem>>, %arg5: memref<1x32xf32, #tpu.memory_space<vmem>>, %arg6: memref<1x32xf32, #tpu.memory_space<vmem>>, %arg7: memref<1x1xf32, #tpu.memory_space<vmem>>, %arg8: memref<1x8xf32, #tpu.memory_space<vmem>>) attributes {dimension_semantics = [#tpu.dimension_semantics<parallel>], iteration_bounds = array<i64: 1>, scalar_prefetch = 0 : i64, scratch_operands = 0 : i64, tpu.core_type = #tpu.core_type<tc>, window_params = [{transform_indices = @transform_0, window_bounds = array<i64: 8, 2310>}, {pipeline_mode = #tpu.pipeline_mode<synchronous>, transform_indices = @transform_1, window_bounds = array<i64: 2310, 256>}, {pipeline_mode = #tpu.pipeline_mode<synchronous>, transform_indices = @transform_2, window_bounds = array<i64: 1, 256>}, {pipeline_mode = #tpu.pipeline_mode<synchronous>, transform_indices = @transform_3, window_bounds = array<i64: 256, 32>}, {pipeline_mode = #tpu.pipeline_mode<synchronous>, transform_indices = @transform_4, window_bounds = array<i64: 1, 32>}, {pipeline_mode = #tpu.pipeline_mode<synchronous>, transform_indices = @transform_5, window_bounds = array<i64: 1, 32>}, {pipeline_mode = #tpu.pipeline_mode<synchronous>, transform_indices = @transform_6, window_bounds = array<i64: 1, 1>}, {transform_indices = @transform_7, window_bounds = array<i64: 1, 8>}]} {
    %c0 = arith.constant 0 : index
    %c0_0 = arith.constant 0 : index
    %0 = vector.load %arg1[%c0, %c0_0] : memref<8x2310xf32, #tpu.memory_space<vmem>>, vector<8x2310xf32>
    %1 = arith.truncf %0 : vector<8x2310xf32> to vector<8x2310xbf16>
    %c0_1 = arith.constant 0 : index
    %c0_2 = arith.constant 0 : index
    %2 = vector.load %arg2[%c0_1, %c0_2] : memref<2310x256xbf16, #tpu.memory_space<vmem>>, vector<2310x256xbf16>
    %cst = arith.constant dense<0.000000e+00> : vector<8x256xf32>
    %3 = tpu.matmul %1, %2, %cst {dimension_numbers = #tpu.dot_dimension_numbers<[1], [0], [0], [1], [0, 0, 1, 1], [], []>} : vector<8x2310xbf16>, vector<2310x256xbf16>, vector<8x256xf32> -> vector<8x256xf32>
    %c0_3 = arith.constant 0 : index
    %c0_4 = arith.constant 0 : index
    %4 = vector.load %arg3[%c0_3, %c0_4] : memref<1x256xf32, #tpu.memory_space<vmem>>, vector<1x256xf32>
    %5 = vector.broadcast %4 : vector<1x256xf32> to vector<8x256xf32>
    %6 = arith.addf %3, %5 : vector<8x256xf32>
    %cst_5 = arith.constant 0.000000e+00 : f32
    %7 = vector.broadcast %cst_5 : f32 to vector<8x256xf32>
    %8 = arith.maximumf %6, %7 : vector<8x256xf32>
    %9 = arith.truncf %8 : vector<8x256xf32> to vector<8x256xbf16>
    %c0_6 = arith.constant 0 : index
    %c0_7 = arith.constant 0 : index
    %10 = vector.load %arg4[%c0_6, %c0_7] : memref<256x32xbf16, #tpu.memory_space<vmem>>, vector<256x32xbf16>
    %cst_8 = arith.constant dense<0.000000e+00> : vector<8x32xf32>
    %11 = tpu.matmul %9, %10, %cst_8 {dimension_numbers = #tpu.dot_dimension_numbers<[1], [0], [0], [1], [0, 0, 1, 1], [], []>} : vector<8x256xbf16>, vector<256x32xbf16>, vector<8x32xf32> -> vector<8x32xf32>
    %c0_9 = arith.constant 0 : index
    %c0_10 = arith.constant 0 : index
    %12 = vector.load %arg5[%c0_9, %c0_10] : memref<1x32xf32, #tpu.memory_space<vmem>>, vector<1x32xf32>
    %13 = vector.broadcast %12 : vector<1x32xf32> to vector<8x32xf32>
    %14 = arith.addf %11, %13 : vector<8x32xf32>
    %cst_11 = arith.constant 0.000000e+00 : f32
    %15 = vector.broadcast %cst_11 : f32 to vector<8x32xf32>
    %16 = arith.maximumf %14, %15 : vector<8x32xf32>
    %c0_12 = arith.constant 0 : index
    %c0_13 = arith.constant 0 : index
    %17 = vector.load %arg6[%c0_12, %c0_13] : memref<1x32xf32, #tpu.memory_space<vmem>>, vector<1x32xf32>
    %18 = vector.broadcast %17 : vector<1x32xf32> to vector<8x32xf32>
    %19 = arith.mulf %16, %18 : vector<8x32xf32>
    %cst_14 = arith.constant dense<0.000000e+00> : vector<8xf32>
    %20 = vector.multi_reduction <add>, %19, %cst_14 [1] : vector<8x32xf32> to vector<8xf32>
    %21 = vector.shape_cast %20 : vector<8xf32> to vector<8x1xf32>
    %c0_15 = arith.constant 0 : index
    %c0_16 = arith.constant 0 : index
    %22 = vector.load %arg7[%c0_15, %c0_16] : memref<1x1xf32, #tpu.memory_space<vmem>>, vector<1x1xf32>
    %23 = vector.broadcast %22 : vector<1x1xf32> to vector<8x1xf32>
    %24 = arith.addf %21, %23 : vector<8x1xf32>
    %25 = tpu.transpose %24, [1, 0] : vector<8x1xf32> -> vector<1x8xf32>
    %c0_17 = arith.constant 0 : index
    %c0_18 = arith.constant 0 : index
    %26 = vector.load %arg8[%c0_17, %c0_18] : memref<1x8xf32, #tpu.memory_space<vmem>>, vector<1x8xf32>
    tpu.vector_store %arg8[%c0_17, %c0_18], %25 {strides = array<i32>} : memref<1x8xf32, #tpu.memory_space<vmem>>, vector<1x8xf32>,
    return
  }
  func.func @transform_0(%arg0: i32) -> (i32, i32) {
    %c0_i32 = arith.constant 0 : i32
    %c0_i32_0 = arith.constant 0 : i32
    return %arg0, %c0_i32 : i32, i32
  }
  func.func @transform_1(%arg0: i32) -> (i32, i32) {
    %c0_i32 = arith.constant 0 : i32
    %c0_i32_0 = arith.constant 0 : i32
    %c0_i32_1 = arith.constant 0 : i32
    return %c0_i32, %c0_i32_0 : i32, i32
  }
  func.func @transform_2(%arg0: i32) -> (i32, i32) {
    %c0_i32 = arith.constant 0 : i32
    %c0_i32_0 = arith.constant 0 : i32
    %c0_i32_1 = arith.constant 0 : i32
    return %c0_i32, %c0_i32_0 : i32, i32
  }
  func.func @transform_3(%arg0: i32) -> (i32, i32) {
    %c0_i32 = arith.constant 0 : i32
    %c0_i32_0 = arith.constant 0 : i32
    %c0_i32_1 = arith.constant 0 : i32
    return %c0_i32, %c0_i32_0 : i32, i32
  }
  func.func @transform_4(%arg0: i32) -> (i32, i32) {
    %c0_i32 = arith.constant 0 : i32
    %c0_i32_0 = arith.constant 0 : i32
    %c0_i32_1 = arith.constant 0 : i32
    return %c0_i32, %c0_i32_0 : i32, i32
  }
  func.func @transform_5(%arg0: i32) -> (i32, i32) {
    %c0_i32 = arith.constant 0 : i32
    %c0_i32_0 = arith.constant 0 : i32
    %c0_i32_1 = arith.constant 0 : i32
    return %c0_i32, %c0_i32_0 : i32, i32
  }
  func.func @transform_6(%arg0: i32) -> (i32, i32) {
    %c0_i32 = arith.constant 0 : i32
    %c0_i32_0 = arith.constant 0 : i32
    %c0_i32_1 = arith.constant 0 : i32
    return %c0_i32, %c0_i32_0 : i32, i32
  }
  func.func @transform_7(%arg0: i32) -> (i32, i32) {
    %c0_i32 = arith.constant 0 : i32
    %c0_i32_0 = arith.constant 0 : i32
    return %arg0, %c0_i32 : i32, i32
  }
}

</mosaic_0001>

<bundles_post_ra>
// kernel: tpu_custom_call.1
= control target key start
LH: loop header
LB: loop body
LE: loop exit
PB: predicated region body
PF: predicated region fallthrough
CT: control target
= control target key end

     0   :  { %s3591_s0 = inlined_call_operand.hbm [shape: f32[8,2310], index: 0, kind: input, shape index: {}]   ;;  %s3592_s1 = inlined_call_operand.hbm [shape: bf16[2310,256], index: 1, kind: input, shape index: {}]   ;;  %s3593_s2 = inlined_call_operand.hbm [shape: f32[1,256], index: 2, kind: input, shape index: {}]   ;;  %s3594_s3 = inlined_call_operand.vmem [shape: bf16[256,32], index: 3, kind: input, shape index: {}]   ;;  %s3595_s4 = inlined_call_operand.hbm [shape: f32[1,32], index: 4, kind: input, shape index: {}]   ;;  %s3596_s5 = inlined_call_operand.hbm [shape: f32[1,32], index: 5, kind: input, shape index: {}]   ;;  %s3597_s6 = inlined_call_operand.<no memory space> [shape: f32[1,1], index: 6, kind: input, shape index: {}]   ;;  %s3598_s7 = inlined_call_operand.hbm [shape: f32[1,8], index: 7, kind: output, shape index: {}]  }
   0x1   :  { %v12_v0 = vstv %s3597_s6 }
   0x2   :  { %13 = vst [vmem:[#allocation2] sm:$0x1] %v12_v0 }
   0x3   :  { %14 = vsyncpa [#allocation4], 0 }
   0x4   :  { %15 = vsyncpa [#allocation7], 0 }
   0x5   :  { %16 = vsyncpa [#allocation10], 0 }
   0x6   :  { %17 = vsyncpa [#allocation5], 0  ;;  %s3467_s26 = smov [#allocation6]  }
   0x7   :  { %s33_s27 = sshll.u32 %s3467_s26, 4  ;;  %s34_s27 = int_to_ptr.vmem [resolvable:$true] %s33_s27 }
   0x8   :  { %s3347_s28 = scalar_lea.vmem %s34_s27, 36992  ;;  %p3352_p1 = scmp.lt.s32.totalorder %s34_s27, %s34_s27 }
   0x9   :  { %p3348_p0 = scmp.ne.s32.totalorder %s34_s27, %s3347_s28  ;;  %p3353_p2 = scmp.lt.s32.totalorder %s3347_s28, %s3347_s28 }
   0xb   :  { %p3354_p3 = por %p3353_p2, %p3352_p1 }
   0xd   :  { %p3355_p4 = pnand %p3354_p3, %p3348_p0 }
   0xf   :  { %3358 = shalt.err (!%p3355_p4)
}
  0x10   :  { %s3468_s29 = smov 128   ;;  %s3469_s30 = smov 8  }
  0x11   :  { %39 = dma.hbm_to_vmem [thread:$0]  %s3592_s1, 36992, %s34_s27, [#allocation7], %s3468_s29, %s3468_s29, %s3469_s30  }
  0x12   :  { %s3470_s6 = smov [#allocation9]   ;;  %s3471_s11 = smov [#allocation3]  }
  0x13   :  { %s58_s10 = sshll.u32 %s3470_s6, 4  ;;  %s24_s12 = sshll.u32 %s3471_s11, 4  ;;  %s59_s10 = int_to_ptr.vmem [resolvable:$true] %s58_s10  ;;  %s25_s12 = int_to_ptr.vmem [resolvable:$true] %s24_s12 }
  0x14   :  { %s3367_s13 = scalar_lea.vmem %s59_s10, 16  ;;  %s3371_s14 = scalar_lea.vmem %s59_s10, 32 }
  0x15   :  { %p3368_p5 = scmp.ne.s32.totalorder %s59_s10, %s3367_s13  ;;  %p3372_p6 = scmp.lt.s32.totalorder %s59_s10, %s59_s10 }
  0x16   :  { %p3373_p7 = scmp.lt.s32.totalorder %s3371_s14, %s3367_s13 }
  0x18   :  { %p3374_p8 = por %p3373_p7, %p3372_p6 }
  0x1a   :  { %p3375_p9 = pnand %p3374_p8, %p3368_p5 }
  0x1c   :  { %3378 = shalt.err (!%p3375_p9)
}
  0x1d   :  { %61 = dma.hbm_to_vmem [thread:$0]  %s3595_s4, 16, %s59_s10, [#allocation10]  }
  0x1e   :  { %s3387_s17 = scalar_lea.vmem %s25_s12, 2432  ;;  %p3392_p11 = scmp.lt.s32.totalorder %s25_s12, %s25_s12 }
  0x1f   :  { %p3388_p10 = scmp.ne.s32.totalorder %s25_s12, %s3387_s17  ;;  %p3393_p12 = scmp.lt.s32.totalorder %s3387_s17, %s3387_s17 }
  0x21   :  { %p3394_p13 = por %p3393_p12, %p3392_p11 }
  0x23   :  { %p3395_p0 = pnand %p3394_p13, %p3388_p10 }
  0x25   :  { %3398 = shalt.err (!%p3395_p0)
}
  0x26   :  { %27 = dma.hbm_to_vmem [thread:$0]  %s3591_s0, 2432, %s25_s12, [#allocation4]  }
  0x27   :  { %s3472_s19 = smov [#allocation8]   ;;  %s3473_s21 = smov [#allocation11]  }
  0x28   :  { %s46_s20 = sshll.u32 %s3472_s19, 4  ;;  %s68_s22 = sshll.u32 %s3473_s21, 4  ;;  %s47_s20 = int_to_ptr.vmem [resolvable:$true] %s46_s20  ;;  %s69_s22 = int_to_ptr.vmem [resolvable:$true] %s68_s22 }
  0x29   :  { %s3407_s23 = scalar_lea.vmem %s47_s20, 32  ;;  %p3412_p2 = scmp.lt.s32.totalorder %s47_s20, %s47_s20 }
  0x2a   :  { %p3408_p1 = scmp.ne.s32.totalorder %s47_s20, %s3407_s23  ;;  %p3413_p3 = scmp.lt.s32.totalorder %s3407_s23, %s3407_s23 }
  0x2c   :  { %p3414_p4 = por %p3413_p3, %p3412_p2 }
  0x2e   :  { %p3415_p5 = pnand %p3414_p4, %p3408_p1 }
  0x30   :  { %3418 = shalt.err (!%p3415_p5)
}
  0x31   :  { %49 = dma.hbm_to_vmem [thread:$0]  %s3593_s2, 32, %s47_s20, [#allocation7]  }
  0x32   :  { %s3427_s25 = scalar_lea.vmem %s69_s22, 16  ;;  %s3431_s0 = scalar_lea.vmem %s69_s22, 32 }
  0x33   :  { %p3428_p6 = scmp.ne.s32.totalorder %s69_s22, %s3427_s25  ;;  %p3432_p7 = scmp.lt.s32.totalorder %s69_s22, %s69_s22 }
  0x34   :  { %p3433_p8 = scmp.lt.s32.totalorder %s3431_s0, %s3427_s25 }
  0x36   :  { %p3434_p9 = por %p3433_p8, %p3432_p7 }
  0x38   :  { %p3435_p10 = pnand %p3434_p9, %p3428_p6 }
  0x3a   :  { %3438 = shalt.err (!%p3435_p10)
}
  0x3b   :  { %71 = dma.hbm_to_vmem [thread:$0]  %s3596_s5, 16, %s69_s22, [#allocation10]  }
  0x3c   :  { %3459 = dma.done.wait [#allocation4], 2432  }
  0x3d   :  { %3460 = vsyncadd [#allocation4], 4294964864 }
  0x3e   :  { %3461 = dma.done.wait [#allocation7], 37024  }
  0x3f   :  { %3462 = vsyncadd [#allocation7], 4294930272 }
  0x40   :  { %3463 = dma.done.wait [#allocation10], 32  }
  0x41   :  { %3464 = vsyncadd [#allocation10], 4294967264  ;;  %v2889_v1 = vld [vmem:[#allocation6 + $0x74] ss:$8 sps:$4 sm:$0xff]   ;;  %v2891_v2 = vld [vmem:[#allocation6 + $0x70] ss:$8 sps:$4 sm:$0xff]  }
  0x42   :  { %1885 = vmatprep.subr.bf16.mxu0 %v2889_v1  ;;  %v2892_v3 = vld [vmem:[#allocation6 + $0x174] ss:$8 sps:$4 sm:$0xff]   ;;  %v2894_v4 = vld [vmem:[#allocation6 + $0x170] ss:$8 sps:$4 sm:$0xff]   ;;  %v2895_v5 = vld [vmem:[#allocation6 + $0x64] ss:$8 sps:$4 sm:$0xff]  }
  0x43   :  { %1886 = vmatpush1.bf16.msra.mxu0 %v2891_v2  ;;  %v2897_v6 = vld [vmem:[#allocation6 + $0x60] ss:$8 sps:$4 sm:$0xff]   ;;  %1926 = vmatprep.subr.bf16.mxu1 %v2892_v3  ;;  %v2898_v7 = vld [vmem:[#allocation6 + $0x164] ss:$8 sps:$4 sm:$0xff]   ;;  %v2901_v9 = vld [vmem:[#allocation6 + $0x54] ss:$8 sps:$4 sm:$0xff]  }
  0x44   :  { %1927 = vmatpush1.bf16.msra.mxu1 %v2894_v4  ;;  %1887 = vmatprep.subr.bf16.mxu0 %v2895_v5  ;;  %v2900_v8 = vld [vmem:[#allocation6 + $0x160] ss:$8 sps:$4 sm:$0xff]   ;;  %v2903_v10 = vld [vmem:[#allocation6 + $0x50] ss:$8 sps:$4 sm:$0xff]   ;;  %v2904_v11 = vld [vmem:[#allocation6 + $0x154] ss:$8 sps:$4 sm:$0xff]  }
  0x45   :  { %1928 = vmatprep.subr.bf16.mxu1 %v2898_v7  ;;  %v2907_v12 = vld [vmem:[#allocation6 + $0x44] ss:$8 sps:$4 sm:$0xff]   ;;  %v2906_v13 = vld [vmem:[#allocation6 + $0x150] ss:$8 sps:$4 sm:$0xff]   ;;  %v2909_v15 = vld [vmem:[#allocation6 + $0x40] ss:$8 sps:$4 sm:$0xff]  }
  0x46   :  { %v2910_v14 = vld [vmem:[#allocation6 + $0x144] ss:$8 sps:$4 sm:$0xff]   ;;  %v2913_v16 = vld [vmem:[#allocation6 + $0x34] ss:$8 sps:$4 sm:$0xff]   ;;  %v2912_v17 = vld [vmem:[#allocation6 + $0x140] ss:$8 sps:$4 sm:$0xff]  }
  0x47   :  { %1888 = vmatpush1.bf16.msra.mxu0 %v2897_v6  ;;  %v2916_v18 = vld [vmem:[#allocation6 + $0x134] ss:$8 sps:$4 sm:$0xff]   ;;  %v2915_v19 = vld [vmem:[#allocation6 + $0x30] ss:$8 sps:$4 sm:$0xff]   ;;  %v2919_v20 = vld [vmem:[#allocation6 + $0x24] ss:$8 sps:$4 sm:$0xff]  }
  0x48   :  { %1889 = vmatprep.subr.bf16.mxu0 %v2901_v9  ;;  %1929 = vmatpush1.bf16.msra.mxu1 %v2900_v8  ;;  %v2918_v21 = vld [vmem:[#allocation6 + $0x130] ss:$8 sps:$4 sm:$0xff]   ;;  %v2922_v22 = vld [vmem:[#allocation6 + $0x124] ss:$8 sps:$4 sm:$0xff]   ;;  %v2921_v23 = vld [vmem:[#allocation6 + $0x20] ss:$8 sps:$4 sm:$0xff]  }
  0x49   :  { %1930 = vmatprep.subr.bf16.mxu1 %v2904_v11  ;;  %v2925_v24 = vld [vmem:[#allocation6 + $0x14] ss:$8 sps:$4 sm:$0xff]   ;;  %v2924_v25 = vld [vmem:[#allocation6 + $0x120] ss:$8 sps:$4 sm:$0xff]   ;;  %v2927_v27 = vld [vmem:[#allocation6 + $0x10] ss:$8 sps:$4 sm:$0xff]  }
  0x4a   :  { %v2928_v26 = vld [vmem:[#allocation6 + $0x114] ss:$8 sps:$4 sm:$0xff]   ;;  %v2931_v28 = vld [vmem:[#allocation6 + $0x4] ss:$8 sps:$4 sm:$0xff]   ;;  %v2930_v29 = vld [vmem:[#allocation6 + $0x110] ss:$8 sps:$4 sm:$0xff]  }
  0x4b   :  { %1890 = vmatpush1.bf16.msra.mxu0 %v2903_v10  ;;  %v2934_v30 = vld [vmem:[#allocation6 + $0x104] ss:$8 sps:$4 sm:$0xff]   ;;  %v2933_v31 = vld [vmem:[#allocation6] ss:$8 sps:$4 sm:$0xff]   ;;  %v2937_v32 = vld [vmem:[#allocation6 + $0xf4] ss:$8 sps:$4 sm:$0xff]  }
  0x4c   :  { %1891 = vmatprep.subr.bf16.mxu0 %v2907_v12  ;;  %1931 = vmatpush1.bf16.msra.mxu1 %v2906_v13  ;;  %v2936_v33 = vld [vmem:[#allocation6 + $0x100] ss:$8 sps:$4 sm:$0xff]   ;;  %v2940_v34 = vld [vmem:[#allocation6 + $0x1f4] ss:$8 sps:$4 sm:$0xff]   ;;  %v2939_v35 = vld [vmem:[#allocation6 + $0xf0] ss:$8 sps:$4 sm:$0xff]  }
  0x4d   :  { %1932 = vmatprep.subr.bf16.mxu1 %v2910_v14  ;;  %v2943_v36 = vld [vmem:[#allocation6 + $0xe4] ss:$8 sps:$4 sm:$0xff]   ;;  %v2942_v37 = vld [vmem:[#allocation6 + $0x1f0] ss:$8 sps:$4 sm:$0xff]   ;;  %v2945_v39 = vld [vmem:[#allocation6 + $0xe0] ss:$8 sps:$4 sm:$0xff]  }
  0x4e   :  { %v2946_v38 = vld [vmem:[#allocation6 + $0x1e4] ss:$8 sps:$4 sm:$0xff]   ;;  %v2949_v40 = vld [vmem:[#allocation6 + $0xd4] ss:$8 sps:$4 sm:$0xff]   ;;  %v2948_v41 = vld [vmem:[#allocation6 + $0x1e0] ss:$8 sps:$4 sm:$0xff]  }
  0x4f   :  { %1892 = vmatpush1.bf16.msra.mxu0 %v2909_v15  ;;  %v2952_v42 = vld [vmem:[#allocation6 + $0x1d4] ss:$8 sps:$4 sm:$0xff]   ;;  %v2951_v43 = vld [vmem:[#allocation6 + $0xd0] ss:$8 sps:$4 sm:$0xff]   ;;  %v2955_v44 = vld [vmem:[#allocation6 + $0xc4] ss:$8 sps:$4 sm:$0xff]  }
  0x50   :  { %1893 = vmatprep.subr.bf16.mxu0 %v2913_v16  ;;  %1933 = vmatpush1.bf16.msra.mxu1 %v2912_v17  ;;  %v2954_v45 = vld [vmem:[#allocation6 + $0x1d0] ss:$8 sps:$4 sm:$0xff]   ;;  %v2958_v46 = vld [vmem:[#allocation6 + $0x1c4] ss:$8 sps:$4 sm:$0xff]   ;;  %v2957_v48 = vld [vmem:[#allocation6 + $0xc0] ss:$8 sps:$4 sm:$0xff]  }
  0x51   :  { %1934 = vmatprep.subr.bf16.mxu1 %v2916_v18  ;;  %v91_v47 = vld [vmem:[#allocation3 + $0x8] sm:$0xff]  ;;  %v93_v51 = vld [vmem:[#allocation3 + $0x18] sm:$0xff]  ;;  %v90_v5 = vld [vmem:[#allocation3] sm:$0xff]  ;;  %vm1878_vm0 = vcmask 1042432   ;;  %vm1874_vm1 = vcmask 48128   ;;  %vm2483_vm2 = vcmask 261120  }
  0x52   :  { %v110_v49 = vpack.c.bf16 %v91_v47, %v91_v47  ;;  %v2961_v50 = vld [vmem:[#allocation6 + $0xb4] ss:$8 sps:$4 sm:$0xff]   ;;  %v2960_v52 = vld [vmem:[#allocation6 + $0x1c0] ss:$8 sps:$4 sm:$0xff]   ;;  %v112_v53 = vpack.c.bf16 %v93_v51, %v93_v51  ;;  %v2963_v55 = vld [vmem:[#allocation6 + $0xb0] ss:$8 sps:$4 sm:$0xff]   ;;  %v109_v8 = vpack.c.bf16 %v90_v5, %v90_v5 }
  0x53   :  { %1894 = vmatpush1.bf16.msra.mxu0 %v2915_v19  ;;  %v2964_v54 = vld [vmem:[#allocation6 + $0x1b4] ss:$8 sps:$4 sm:$0xff]   ;;  %v2967_v56 = vld [vmem:[#allocation6 + $0xa4] ss:$8 sps:$4 sm:$0xff]   ;;  %v2966_v57 = vld [vmem:[#allocation6 + $0x1b0] ss:$8 sps:$4 sm:$0xff]  }
  0x54   :  { %1895 = vmatprep.subr.bf16.mxu0 %v2919_v20  ;;  %1935 = vmatpush1.bf16.msra.mxu1 %v2918_v21  ;;  %v2970_v58 = vld [vmem:[#allocation6 + $0x1a4] ss:$8 sps:$4 sm:$0xff]   ;;  %v2969_v59 = vld [vmem:[#allocation6 + $0xa0] ss:$8 sps:$4 sm:$0xff]   ;;  %v2973_v60 = vld [vmem:[#allocation6 + $0x94] ss:$8 sps:$4 sm:$0xff]  }
  0x55   :  { %1936 = vmatprep.subr.bf16.mxu1 %v2922_v22  ;;  %1917 = vmatprep.mubr.bf16.mxu0 %v110_v49  ;;  %v2972_v61 = vld [vmem:[#allocation6 + $0x1a0] ss:$8 sps:$4 sm:$0xff]   ;;  %v2976_v62 = vld [vmem:[#allocation6 + $0x194] ss:$8 sps:$4 sm:$0xff]   ;;  %v2975_v63 = vld [vmem:[#allocation6 + $0x90] ss:$8 sps:$4 sm:$0xff]  }
  0x56   :  { %1958 = vmatprep.mubr.bf16.mxu1 %v112_v53  ;;  %v2979_v0 = vld [vmem:[#allocation6 + $0x84] ss:$8 sps:$4 sm:$0xff]   ;;  %v2978_v1 = vld [vmem:[#allocation6 + $0x190] ss:$8 sps:$4 sm:$0xff]   ;;  %v2981_v2 = vld [vmem:[#allocation6 + $0x80] ss:$8 sps:$4 sm:$0xff]  }
  0x57   :  { %1896 = vmatpush1.bf16.msra.mxu0 %v2921_v23  ;;  %v2982_v3 = vld [vmem:[#allocation6 + $0x184] ss:$8 sps:$4 sm:$0xff]   ;;  %v2984_v4 = vld [vmem:[#allocation6 + $0x180] ss:$8 sps:$4 sm:$0xff]   ;;  %v2987_v6 = vld [vmem:[#allocation6 + $0x274] ss:$8 sps:$4 sm:$0xff]  }
  0x58   :  { %1897 = vmatprep.subr.bf16.mxu0 %v2925_v24  ;;  %1937 = vmatpush1.bf16.msra.mxu1 %v2924_v25  ;;  %v92_v7 = vld [vmem:[#allocation3 + $0x10] sm:$0xff]  ;;  %v2993_v12 = vld [vmem:[#allocation6 + $0x264] ss:$8 sps:$4 sm:$0xff]   ;;  %v2991_v15 = vld [vmem:[#allocation6 + $0x260] ss:$8 sps:$4 sm:$0xff]   ;;  %vm2527_vm3 = vcmask 57344  }
  0x59   :  { %1938 = vmatprep.subr.bf16.mxu1 %v2928_v26  ;;  %v2990_v9 = vld [vmem:[#allocation6 + $0x374] ss:$8 sps:$4 sm:$0xff]   ;;  %v2985_v10 = vld [vmem:[#allocation6 + $0x270] ss:$8 sps:$4 sm:$0xff]   ;;  %v111_v11 = vpack.c.bf16 %v92_v7, %v92_v7  ;;  %v2996_v14 = vld [vmem:[#allocation6 + $0x364] ss:$8 sps:$4 sm:$0xff]  }
  0x5a   :  { %v2988_v13 = vld [vmem:[#allocation6 + $0x370] ss:$8 sps:$4 sm:$0xff]   ;;  %v2999_v16 = vld [vmem:[#allocation6 + $0x254] ss:$8 sps:$4 sm:$0xff]   ;;  %v2994_v17 = vld [vmem:[#allocation6 + $0x360] ss:$8 sps:$4 sm:$0xff]  }
  0x5b   :  { %1898 = vmatpush1.bf16.msra.mxu0 %v2927_v27  ;;  %v3002_v18 = vld [vmem:[#allocation6 + $0x354] ss:$8 sps:$4 sm:$0xff]   ;;  %v2997_v19 = vld [vmem:[#allocation6 + $0x250] ss:$8 sps:$4 sm:$0xff]   ;;  %v3005_v20 = vld [vmem:[#allocation6 + $0x244] ss:$8 sps:$4 sm:$0xff]  }
  0x5c   :  { %1899 = vmatprep.subr.bf16.mxu0 %v2931_v28  ;;  %1939 = vmatpush1.bf16.msra.mxu1 %v2930_v29  ;;  %v3000_v21 = vld [vmem:[#allocation6 + $0x350] ss:$8 sps:$4 sm:$0xff]   ;;  %v3008_v22 = vld [vmem:[#allocation6 + $0x344] ss:$8 sps:$4 sm:$0xff]   ;;  %v3003_v23 = vld [vmem:[#allocation6 + $0x240] ss:$8 sps:$4 sm:$0xff]  }
  0x5d   :  { %1940 = vmatprep.subr.bf16.mxu1 %v2934_v30  ;;  %v3011_v24 = vld [vmem:[#allocation6 + $0x234] ss:$8 sps:$4 sm:$0xff]   ;;  %v3006_v25 = vld [vmem:[#allocation6 + $0x340] ss:$8 sps:$4 sm:$0xff]   ;;  %v3009_v27 = vld [vmem:[#allocation6 + $0x230] ss:$8 sps:$4 sm:$0xff]  }
  0x5e   :  { %v3014_v26 = vld [vmem:[#allocation6 + $0x334] ss:$8 sps:$4 sm:$0xff]   ;;  %v3017_v28 = vld [vmem:[#allocation6 + $0x224] ss:$8 sps:$4 sm:$0xff]   ;;  %v3012_v29 = vld [vmem:[#allocation6 + $0x330] ss:$8 sps:$4 sm:$0xff]  }
  0x5f   :  { %1900 = vmatpush1.bf16.msra.mxu0 %v2933_v31  ;;  %v3020_v30 = vld [vmem:[#allocation6 + $0x324] ss:$8 sps:$4 sm:$0xff]   ;;  %v3015_v31 = vld [vmem:[#allocation6 + $0x220] ss:$8 sps:$4 sm:$0xff]   ;;  %v3033_v47 = vld [vmem:[#allocation6 + $0x2f0] ss:$8 sps:$4 sm:$0xff]  }
  0x60   :  { %1901 = vmatprep.subr.bf16.mxu0 %v2937_v32  ;;  %1941 = vmatpush1.bf16.msra.mxu1 %v2936_v33  ;;  %v3023_v32 = vld [vmem:[#allocation6 + $0x214] ss:$8 sps:$4 sm:$0xff]   ;;  %v3018_v33 = vld [vmem:[#allocation6 + $0x320] ss:$8 sps:$4 sm:$0xff]   ;;  %v3036_v49 = vld [vmem:[#allocation6 + $0x3f0] ss:$8 sps:$4 sm:$0xff]  }
  0x61   :  { %1942 = vmatprep.subr.bf16.mxu1 %v2940_v34  ;;  %v3026_v34 = vld [vmem:[#allocation6 + $0x314] ss:$8 sps:$4 sm:$0xff]   ;;  %v3039_v51 = vld [vmem:[#allocation6 + $0x2e0] ss:$8 sps:$4 sm:$0xff]   ;;  %v3069_v7 = vld [vmem:[#allocation6 + $0x290] ss:$8 sps:$4 sm:$0xff]  }
  0x62   :  { %v3042_v53 = vld [vmem:[#allocation6 + $0x3e0] ss:$8 sps:$4 sm:$0xff]  }
  0x63   :  { %1902 = vmatpush2.bf16.msra.mxu0 %v2939_v35  ;;  %v95_v35 = vld [vmem:[#allocation3 + $0x28] sm:$0xff]  ;;  %v3066_v5 = vld [vmem:[#allocation6 + $0x3a0] ss:$8 sps:$4 sm:$0xff]  }
  0x64   :  { %1903 = vmatprep.subr.bf16.mxu0 %v2943_v36  ;;  %1943 = vmatpush2.bf16.msra.mxu1 %v2942_v37  ;;  %v3021_v36 = vld [vmem:[#allocation6 + $0x210] ss:$8 sps:$4 sm:$0xff]   ;;  %v114_v37 = vpack.c.bf16 %v95_v35, %v95_v35  ;;  %v3099_v35 = vld [vmem:[#allocation6 + $0x440] ss:$8 sps:$4 sm:$0xff]  }
  0x65   :  { %1944 = vmatprep.subr.bf16.mxu1 %v2946_v38  ;;  %v3029_v38 = vld [vmem:[#allocation6 + $0x204] ss:$8 sps:$4 sm:$0xff]  }
  0x67   :  { %1904 = vmatpush2.bf16.msra.mxu0 %v2945_v39  ;;  %v97_v39 = vld [vmem:[#allocation3 + $0x38] sm:$0xff] }
  0x68   :  { %1905 = vmatprep.subr.bf16.mxu0 %v2949_v40  ;;  %1945 = vmatpush2.bf16.msra.mxu1 %v2948_v41  ;;  %v3024_v40 = vld [vmem:[#allocation6 + $0x310] ss:$8 sps:$4 sm:$0xff]   ;;  %v116_v41 = vpack.c.bf16 %v97_v39, %v97_v39 }
  0x69   :  { %1946 = vmatprep.subr.bf16.mxu1 %v2952_v42  ;;  %v3032_v42 = vld [vmem:[#allocation6 + $0x304] ss:$8 sps:$4 sm:$0xff]   ;;  %v3105_v39 = vld [vmem:[#allocation6 + $0x430] ss:$8 sps:$4 sm:$0xff]  }
  0x6b   :  { %1906 = vmatpush2.bf16.msra.mxu0 %v2951_v43  ;;  %v3027_v43 = vld [vmem:[#allocation6 + $0x200] ss:$8 sps:$4 sm:$0xff]  }
  0x6c   :  { %1907 = vmatprep.subr.bf16.mxu0 %v2955_v44  ;;  %1947 = vmatpush2.bf16.msra.mxu1 %v2954_v45  ;;  %v3035_v44 = vld [vmem:[#allocation6 + $0x2f4] ss:$8 sps:$4 sm:$0xff]   ;;  %v3030_v45 = vld [vmem:[#allocation6 + $0x300] ss:$8 sps:$4 sm:$0xff]  }
  0x6d   :  { %1948 = vmatprep.subr.bf16.mxu1 %v2958_v46  ;;  %v3038_v46 = vld [vmem:[#allocation6 + $0x3f4] ss:$8 sps:$4 sm:$0xff]  }
  0x6f   :  { %1908 = vmatpush2.bf16.msra.mxu0 %v2957_v48  ;;  %v3041_v48 = vld [vmem:[#allocation6 + $0x2e4] ss:$8 sps:$4 sm:$0xff]  }
  0x70   :  { %1909 = vmatprep.subr.bf16.mxu0 %v2961_v50  ;;  %1949 = vmatpush2.bf16.msra.mxu1 %v2960_v52  ;;  %v3044_v50 = vld [vmem:[#allocation6 + $0x3e4] ss:$8 sps:$4 sm:$0xff]   ;;  %v3047_v52 = vld [vmem:[#allocation6 + $0x2d4] ss:$8 sps:$4 sm:$0xff]  }
  0x71   :  { %1950 = vmatprep.subr.bf16.mxu1 %v2964_v54  ;;  %v3050_v54 = vld [vmem:[#allocation6 + $0x3d4] ss:$8 sps:$4 sm:$0xff]  }
  0x73   :  { %1910 = vmatpush2.bf16.msra.mxu0 %v2963_v55  ;;  %v3045_v55 = vld [vmem:[#allocation6 + $0x2d0] ss:$8 sps:$4 sm:$0xff]  }
  0x74   :  { %1911 = vmatprep.subr.bf16.mxu0 %v2967_v56  ;;  %1951 = vmatpush2.bf16.msra.mxu1 %v2966_v57  ;;  %v3053_v56 = vld [vmem:[#allocation6 + $0x2c4] ss:$8 sps:$4 sm:$0xff]   ;;  %v3048_v57 = vld [vmem:[#allocation6 + $0x3d0] ss:$8 sps:$4 sm:$0xff]  }
  0x75   :  { %1952 = vmatprep.subr.bf16.mxu1 %v2970_v58  ;;  %v3056_v58 = vld [vmem:[#allocation6 + $0x3c4] ss:$8 sps:$4 sm:$0xff]  }
  0x77   :  { %1912 = vmatpush2.bf16.msra.mxu0 %v2969_v59  ;;  %v3051_v59 = vld [vmem:[#allocation6 + $0x2c0] ss:$8 sps:$4 sm:$0xff]  }
  0x78   :  { %1913 = vmatprep.subr.bf16.mxu0 %v2973_v60  ;;  %1953 = vmatpush2.bf16.msra.mxu1 %v2972_v61  ;;  %v3059_v60 = vld [vmem:[#allocation6 + $0x2b4] ss:$8 sps:$4 sm:$0xff]   ;;  %v3054_v61 = vld [vmem:[#allocation6 + $0x3c0] ss:$8 sps:$4 sm:$0xff]  }
  0x79   :  { %1954 = vmatprep.subr.bf16.mxu1 %v2976_v62  ;;  %v3062_v62 = vld [vmem:[#allocation6 + $0x3b4] ss:$8 sps:$4 sm:$0xff]  }
  0x7b   :  { %1914 = vmatpush2.bf16.msra.mxu0 %v2975_v63  ;;  %v3057_v63 = vld [vmem:[#allocation6 + $0x2b0] ss:$8 sps:$4 sm:$0xff]  }
  0x7c   :  { %1915 = vmatprep.subr.bf16.mxu0 %v2979_v0  ;;  %1955 = vmatpush2.bf16.msra.mxu1 %v2978_v1  ;;  %v3065_v0 = vld [vmem:[#allocation6 + $0x2a4] ss:$8 sps:$4 sm:$0xff]   ;;  %v3060_v1 = vld [vmem:[#allocation6 + $0x3b0] ss:$8 sps:$4 sm:$0xff]  }
  0x7d   :  { %1956 = vmatprep.subr.bf16.mxu1 %v2982_v3  ;;  %v3063_v3 = vld [vmem:[#allocation6 + $0x2a0] ss:$8 sps:$4 sm:$0xff]  }
  0x7f   :  { %1916 = vmatpush2.bf16.msra.mxu0 %v2981_v2  ;;  %v3068_v2 = vld [vmem:[#allocation6 + $0x3a4] ss:$8 sps:$4 sm:$0xff]  }
  0x80   :  { %1967 = vmatprep.subr.bf16.mxu0 %v2987_v6  ;;  %1957 = vmatpush2.bf16.msra.mxu1 %v2984_v4  ;;  %v3071_v4 = vld [vmem:[#allocation6 + $0x294] ss:$8 sps:$4 sm:$0xff]  }
  0x81   :  { %2008 = vmatprep.subr.bf16.mxu1 %v2990_v9  ;;  %v3074_v6 = vld [vmem:[#allocation6 + $0x394] ss:$8 sps:$4 sm:$0xff]   ;;  %v3072_v9 = vld [vmem:[#allocation6 + $0x390] ss:$8 sps:$4 sm:$0xff]  }
  0x82   :  { %1918 = vmatmul.mubr.bf16.vlgmr.msra.gmra.mxu0 %v109_v8  ;;  %v3077_v8 = vld [vmem:[#allocation6 + $0x284] ss:$8 sps:$4 sm:$0xff]  }
  0x83   :  { %1968 = vmatpush1.bf16.msra.mxu0 %v2985_v10  ;;  %1959 = vmatmul.mubr.bf16.vlgmr.msra.gmra.mxu1 %v111_v11  ;;  %v3075_v10 = vld [vmem:[#allocation6 + $0x280] ss:$8 sps:$4 sm:$0xff]   ;;  %v3080_v11 = vld [vmem:[#allocation6 + $0x384] ss:$8 sps:$4 sm:$0xff]  }
  0x84   :  { %1969 = vmatprep.subr.bf16.mxu0 %v2993_v12  ;;  %2009 = vmatpush1.bf16.msra.mxu1 %v2988_v13  ;;  %v3078_v12 = vld [vmem:[#allocation6 + $0x380] ss:$8 sps:$4 sm:$0xff]  }
  0x85   :  { %2010 = vmatprep.subr.bf16.mxu1 %v2996_v14  ;;  %1999 = vmatprep.mubr.bf16.mxu0 %v114_v37  ;;  %v94_v13 = vld [vmem:[#allocation3 + $0x20] sm:$0xff]  ;;  %v3083_v14 = vld [vmem:[#allocation6 + $0x474] ss:$8 sps:$4 sm:$0xff]  }
  0x86   :  { %2040 = vmatprep.mubr.bf16.mxu1 %v116_v41  ;;  %v3102_v37 = vld [vmem:[#allocation6 + $0x540] ss:$8 sps:$4 sm:$0xff]   ;;  %v3108_v41 = vld [vmem:[#allocation6 + $0x530] ss:$8 sps:$4 sm:$0xff]  }
  0x87   :  { %1970 = vmatpush1.bf16.msra.mxu0 %v2991_v15  ;;  %v96_v15 = vld [vmem:[#allocation3 + $0x30] sm:$0xff] }
  0x88   :  { %1971 = vmatprep.subr.bf16.mxu0 %v2999_v16  ;;  %2011 = vmatpush1.bf16.msra.mxu1 %v2994_v17  ;;  %v113_v16 = vpack.c.bf16 %v94_v13, %v94_v13  ;;  %v3086_v17 = vld [vmem:[#allocation6 + $0x574] ss:$8 sps:$4 sm:$0xff]   ;;  %v3162_v13 = vld [vmem:[#allocation6 + $0x5a0] ss:$8 sps:$4 sm:$0xff]  }
  0x89   :  { %2012 = vmatprep.subr.bf16.mxu1 %v3002_v18  ;;  %v3081_v18 = vld [vmem:[#allocation6 + $0x470] ss:$8 sps:$4 sm:$0xff]  }
  0x8b   :  { %1972 = vmatpush1.bf16.msra.mxu0 %v2997_v19  ;;  %v115_v19 = vpack.c.bf16 %v96_v15, %v96_v15  ;;  %v3165_v15 = vld [vmem:[#allocation6 + $0x490] ss:$8 sps:$4 sm:$0xff]  }
  0x8c   :  { %1973 = vmatprep.subr.bf16.mxu0 %v3005_v20  ;;  %2013 = vmatpush1.bf16.msra.mxu1 %v3000_v21  ;;  %v3089_v20 = vld [vmem:[#allocation6 + $0x464] ss:$8 sps:$4 sm:$0xff]   ;;  %v3084_v21 = vld [vmem:[#allocation6 + $0x570] ss:$8 sps:$4 sm:$0xff]  }
  0x8d   :  { %2014 = vmatprep.subr.bf16.mxu1 %v3008_v22  ;;  %v3092_v22 = vld [vmem:[#allocation6 + $0x564] ss:$8 sps:$4 sm:$0xff]  }
  0x8f   :  { %1974 = vmatpush1.bf16.msra.mxu0 %v3003_v23  ;;  %v99_v23 = vld [vmem:[#allocation3 + $0x48] sm:$0xff] }
  0x90   :  { %1975 = vmatprep.subr.bf16.mxu0 %v3011_v24  ;;  %2015 = vmatpush1.bf16.msra.mxu1 %v3006_v25  ;;  %v3087_v24 = vld [vmem:[#allocation6 + $0x460] ss:$8 sps:$4 sm:$0xff]   ;;  %v118_v25 = vpack.c.bf16 %v99_v23, %v99_v23 }
  0x91   :  { %2016 = vmatprep.subr.bf16.mxu1 %v3014_v26  ;;  %v3095_v26 = vld [vmem:[#allocation6 + $0x454] ss:$8 sps:$4 sm:$0xff]   ;;  %v3174_v23 = vld [vmem:[#allocation6 + $0x580] ss:$8 sps:$4 sm:$0xff]  }
  0x93   :  { %1976 = vmatpush1.bf16.msra.mxu0 %v3009_v27  ;;  %v101_v27 = vld [vmem:[#allocation3 + $0x58] sm:$0xff] }
  0x94   :  { %1977 = vmatprep.subr.bf16.mxu0 %v3017_v28  ;;  %2017 = vmatpush1.bf16.msra.mxu1 %v3012_v29  ;;  %v3090_v28 = vld [vmem:[#allocation6 + $0x560] ss:$8 sps:$4 sm:$0xff]   ;;  %v120_v29 = vpack.c.bf16 %v101_v27, %v101_v27 }
  0x95   :  { %2018 = vmatprep.subr.bf16.mxu1 %v3020_v30  ;;  %v3098_v30 = vld [vmem:[#allocation6 + $0x554] ss:$8 sps:$4 sm:$0xff]   ;;  %v105_v27 = vld [vmem:[#allocation3 + $0x78] sm:$0xff] }
  0x97   :  { %1978 = vmatpush1.bf16.msra.mxu0 %v3015_v31  ;;  %v3093_v31 = vld [vmem:[#allocation6 + $0x450] ss:$8 sps:$4 sm:$0xff]  }
  0x98   :  { %1979 = vmatprep.subr.bf16.mxu0 %v3023_v32  ;;  %2019 = vmatpush1.bf16.msra.mxu1 %v3018_v33  ;;  %v3101_v32 = vld [vmem:[#allocation6 + $0x444] ss:$8 sps:$4 sm:$0xff]   ;;  %v3096_v33 = vld [vmem:[#allocation6 + $0x550] ss:$8 sps:$4 sm:$0xff]  }
  0x99   :  { %2020 = vmatprep.subr.bf16.mxu1 %v3026_v34  ;;  %v3104_v34 = vld [vmem:[#allocation6 + $0x544] ss:$8 sps:$4 sm:$0xff]  }
  0x9b   :  { %1980 = vmatpush1.bf16.msra.mxu0 %v3021_v36  ;;  %v3107_v36 = vld [vmem:[#allocation6 + $0x434] ss:$8 sps:$4 sm:$0xff]  }
  0x9c   :  { %1981 = vmatprep.subr.bf16.mxu0 %v3029_v38  ;;  %2021 = vmatpush1.bf16.msra.mxu1 %v3024_v40  ;;  %v3110_v38 = vld [vmem:[#allocation6 + $0x534] ss:$8 sps:$4 sm:$0xff]   ;;  %v3113_v40 = vld [vmem:[#allocation6 + $0x424] ss:$8 sps:$4 sm:$0xff]  }
  0x9d   :  { %2022 = vmatprep.subr.bf16.mxu1 %v3032_v42  ;;  %v3116_v42 = vld [vmem:[#allocation6 + $0x524] ss:$8 sps:$4 sm:$0xff]  }
  0x9f   :  { %1982 = vmatpush1.bf16.msra.mxu0 %v3027_v43  ;;  %v3111_v43 = vld [vmem:[#allocation6 + $0x420] ss:$8 sps:$4 sm:$0xff]  }
  0xa0   :  { %1983 = vmatprep.subr.bf16.mxu0 %v3035_v44  ;;  %2023 = vmatpush1.bf16.msra.mxu1 %v3030_v45  ;;  %v3119_v44 = vld [vmem:[#allocation6 + $0x414] ss:$8 sps:$4 sm:$0xff]   ;;  %v3114_v45 = vld [vmem:[#allocation6 + $0x520] ss:$8 sps:$4 sm:$0xff]  }
  0xa1   :  { %2024 = vmatprep.subr.bf16.mxu1 %v3038_v46  ;;  %v3122_v46 = vld [vmem:[#allocation6 + $0x514] ss:$8 sps:$4 sm:$0xff]  }
  0xa3   :  { %1984 = vmatpush2.bf16.msra.mxu0 %v3033_v47  ;;  %v3117_v47 = vld [vmem:[#allocation6 + $0x410] ss:$8 sps:$4 sm:$0xff]  }
  0xa4   :  { %1985 = vmatprep.subr.bf16.mxu0 %v3041_v48  ;;  %2025 = vmatpush2.bf16.msra.mxu1 %v3036_v49  ;;  %v3125_v48 = vld [vmem:[#allocation6 + $0x404] ss:$8 sps:$4 sm:$0xff]   ;;  %v3120_v49 = vld [vmem:[#allocation6 + $0x510] ss:$8 sps:$4 sm:$0xff]  }
  0xa5   :  { %2026 = vmatprep.subr.bf16.mxu1 %v3044_v50  ;;  %v3128_v50 = vld [vmem:[#allocation6 + $0x504] ss:$8 sps:$4 sm:$0xff]  }
  0xa7   :  { %1986 = vmatpush2.bf16.msra.mxu0 %v3039_v51  ;;  %v3123_v51 = vld [vmem:[#allocation6 + $0x400] ss:$8 sps:$4 sm:$0xff]  }
  0xa8   :  { %1987 = vmatprep.subr.bf16.mxu0 %v3047_v52  ;;  %2027 = vmatpush2.bf16.msra.mxu1 %v3042_v53  ;;  %v3131_v52 = vld [vmem:[#allocation6 + $0x4f4] ss:$8 sps:$4 sm:$0xff]   ;;  %v3126_v53 = vld [vmem:[#allocation6 + $0x500] ss:$8 sps:$4 sm:$0xff]  }
  0xa9   :  { %2028 = vmatprep.subr.bf16.mxu1 %v3050_v54  ;;  %v3134_v54 = vld [vmem:[#allocation6 + $0x5f4] ss:$8 sps:$4 sm:$0xff]  }
  0xab   :  { %1988 = vmatpush2.bf16.msra.mxu0 %v3045_v55  ;;  %v3129_v55 = vld [vmem:[#allocation6 + $0x4f0] ss:$8 sps:$4 sm:$0xff]  }
  0xac   :  { %1989 = vmatprep.subr.bf16.mxu0 %v3053_v56  ;;  %2029 = vmatpush2.bf16.msra.mxu1 %v3048_v57  ;;  %v3137_v56 = vld [vmem:[#allocation6 + $0x4e4] ss:$8 sps:$4 sm:$0xff]   ;;  %v3132_v57 = vld [vmem:[#allocation6 + $0x5f0] ss:$8 sps:$4 sm:$0xff]  }
  0xad   :  { %2030 = vmatprep.subr.bf16.mxu1 %v3056_v58  ;;  %v3140_v58 = vld [vmem:[#allocation6 + $0x5e4] ss:$8 sps:$4 sm:$0xff]  }
  0xaf   :  { %1990 = vmatpush2.bf16.msra.mxu0 %v3051_v59  ;;  %v3135_v59 = vld [vmem:[#allocation6 + $0x4e0] ss:$8 sps:$4 sm:$0xff]  }
  0xb0   :  { %1991 = vmatprep.subr.bf16.mxu0 %v3059_v60  ;;  %2031 = vmatpush2.bf16.msra.mxu1 %v3054_v61  ;;  %v3143_v60 = vld [vmem:[#allocation6 + $0x4d4] ss:$8 sps:$4 sm:$0xff]   ;;  %v3138_v61 = vld [vmem:[#allocation6 + $0x5e0] ss:$8 sps:$4 sm:$0xff]  }
  0xb1   :  { %2032 = vmatprep.subr.bf16.mxu1 %v3062_v62  ;;  %v3146_v62 = vld [vmem:[#allocation6 + $0x5d4] ss:$8 sps:$4 sm:$0xff]  }
  0xb3   :  { %1992 = vmatpush2.bf16.msra.mxu0 %v3057_v63  ;;  %v3141_v63 = vld [vmem:[#allocation6 + $0x4d0] ss:$8 sps:$4 sm:$0xff]  }
  0xb4   :  { %1993 = vmatprep.subr.bf16.mxu0 %v3065_v0  ;;  %2033 = vmatpush2.bf16.msra.mxu1 %v3060_v1  ;;  %v3149_v0 = vld [vmem:[#allocation6 + $0x4c4] ss:$8 sps:$4 sm:$0xff]   ;;  %v3144_v1 = vld [vmem:[#allocation6 + $0x5d0] ss:$8 sps:$4 sm:$0xff]  }
  0xb5   :  { %2034 = vmatprep.subr.bf16.mxu1 %v3068_v2  ;;  %v3152_v2 = vld [vmem:[#allocation6 + $0x5c4] ss:$8 sps:$4 sm:$0xff]  }
  0xb7   :  { %1994 = vmatpush2.bf16.msra.mxu0 %v3063_v3  ;;  %v3147_v3 = vld [vmem:[#allocation6 + $0x4c0] ss:$8 sps:$4 sm:$0xff]  }
  0xb8   :  { %1995 = vmatprep.subr.bf16.mxu0 %v3071_v4  ;;  %2035 = vmatpush2.bf16.msra.mxu1 %v3066_v5  ;;  %v3155_v4 = vld [vmem:[#allocation6 + $0x4b4] ss:$8 sps:$4 sm:$0xff]   ;;  %v3150_v5 = vld [vmem:[#allocation6 + $0x5c0] ss:$8 sps:$4 sm:$0xff]  }
  0xb9   :  { %2036 = vmatprep.subr.bf16.mxu1 %v3074_v6  ;;  %v3158_v6 = vld [vmem:[#allocation6 + $0x5b4] ss:$8 sps:$4 sm:$0xff]  }
  0xbb   :  { %1996 = vmatpush2.bf16.msra.mxu0 %v3069_v7  ;;  %v3153_v7 = vld [vmem:[#allocation6 + $0x4b0] ss:$8 sps:$4 sm:$0xff]  }
  0xbc   :  { %1997 = vmatprep.subr.bf16.mxu0 %v3077_v8  ;;  %2037 = vmatpush2.bf16.msra.mxu1 %v3072_v9  ;;  %v3161_v8 = vld [vmem:[#allocation6 + $0x4a4] ss:$8 sps:$4 sm:$0xff]   ;;  %v3156_v9 = vld [vmem:[#allocation6 + $0x5b0] ss:$8 sps:$4 sm:$0xff]  }
  0xbd   :  { %2038 = vmatprep.subr.bf16.mxu1 %v3080_v11  ;;  %v3159_v11 = vld [vmem:[#allocation6 + $0x4a0] ss:$8 sps:$4 sm:$0xff]  }
  0xbf   :  { %1998 = vmatpush2.bf16.msra.mxu0 %v3075_v10  ;;  %v3164_v10 = vld [vmem:[#allocation6 + $0x5a4] ss:$8 sps:$4 sm:$0xff]  }
  0xc0   :  { %2049 = vmatprep.subr.bf16.mxu0 %v3083_v14  ;;  %2039 = vmatpush2.bf16.msra.mxu1 %v3078_v12  ;;  %v3167_v12 = vld [vmem:[#allocation6 + $0x494] ss:$8 sps:$4 sm:$0xff]  }
  0xc1   :  { %2090 = vmatprep.subr.bf16.mxu1 %v3086_v17  ;;  %v3170_v14 = vld [vmem:[#allocation6 + $0x594] ss:$8 sps:$4 sm:$0xff]   ;;  %v3168_v17 = vld [vmem:[#allocation6 + $0x590] ss:$8 sps:$4 sm:$0xff]  }
  0xc2   :  { %2000 = vmatmul.mubr.bf16.vlgmr.msra.gmra.mxu0 %v113_v16  ;;  %v3173_v16 = vld [vmem:[#allocation6 + $0x484] ss:$8 sps:$4 sm:$0xff]  }
  0xc3   :  { %2050 = vmatpush1.bf16.msra.mxu0 %v3081_v18  ;;  %2041 = vmatmul.mubr.bf16.vlgmr.msra.gmra.mxu1 %v115_v19  ;;  %v3171_v18 = vld [vmem:[#allocation6 + $0x480] ss:$8 sps:$4 sm:$0xff]   ;;  %v3176_v19 = vld [vmem:[#allocation6 + $0x584] ss:$8 sps:$4 sm:$0xff]  }
  0xc4   :  { %2051 = vmatprep.subr.bf16.mxu0 %v3089_v20  ;;  %2091 = vmatpush1.bf16.msra.mxu1 %v3084_v21  ;;  %v98_v20 = vld [vmem:[#allocation3 + $0x40] sm:$0xff]  ;;  %v3179_v21 = vld [vmem:[#allocation6 + $0x674] ss:$8 sps:$4 sm:$0xff]  }
  0xc5   :  { %2081 = vmatprep.mubr.bf16.mxu0 %v118_v25  ;;  %2092 = vmatprep.subr.bf16.mxu1 %v3092_v22  ;;  %v103_v22 = vld [vmem:[#allocation3 + $0x68] sm:$0xff]  ;;  %v117_v25 = vpack.c.bf16 %v98_v20, %v98_v20  ;;  %v419_v20 = vlaneseq }
  0xc6   :  { %2122 = vmatprep.mubr.bf16.mxu1 %v120_v29  ;;  %v122_v29 = vpack.c.bf16 %v103_v22, %v103_v22  ;;  %v3258_v22 = vld [vmem:[#allocation6 + $0x7a0] ss:$8 sps:$4 sm:$0xff]  }
  0xc7   :  { %2052 = vmatpush1.bf16.msra.mxu0 %v3087_v24  ;;  %v100_v24 = vld [vmem:[#allocation3 + $0x50] sm:$0xff] }
  0xc8   :  { %2053 = vmatprep.subr.bf16.mxu0 %v3095_v26  ;;  %2093 = vmatpush1.bf16.msra.mxu1 %v3090_v28  ;;  %v3182_v26 = vld [vmem:[#allocation6 + $0x774] ss:$8 sps:$4 sm:$0xff]   ;;  %v3177_v28 = vld [vmem:[#allocation6 + $0x670] ss:$8 sps:$4 sm:$0xff]  }
  0xc9   :  { %2094 = vmatprep.subr.bf16.mxu1 %v3098_v30  ;;  %v119_v30 = vpack.c.bf16 %v100_v24, %v100_v24  ;;  %v3261_v24 = vld [vmem:[#allocation6 + $0x690] ss:$8 sps:$4 sm:$0xff]  }
  0xcb   :  { %2054 = vmatpush1.bf16.msra.mxu0 %v3093_v31  ;;  %v3185_v31 = vld [vmem:[#allocation6 + $0x664] ss:$8 sps:$4 sm:$0xff]  }
  0xcc   :  { %2055 = vmatprep.subr.bf16.mxu0 %v3101_v32  ;;  %2095 = vmatpush1.bf16.msra.mxu1 %v3096_v33  ;;  %v3180_v32 = vld [vmem:[#allocation6 + $0x770] ss:$8 sps:$4 sm:$0xff]   ;;  %v124_v33 = vpack.c.bf16 %v105_v27, %v105_v27 }
  0xcd   :  { %2096 = vmatprep.subr.bf16.mxu1 %v3104_v34  ;;  %v3188_v34 = vld [vmem:[#allocation6 + $0x764] ss:$8 sps:$4 sm:$0xff]   ;;  %v3264_v27 = vld [vmem:[#allocation6 + $0x790] ss:$8 sps:$4 sm:$0xff]  }
  0xcf   :  { %2056 = vmatpush1.bf16.msra.mxu0 %v3099_v35  ;;  %v3183_v35 = vld [vmem:[#allocation6 + $0x660] ss:$8 sps:$4 sm:$0xff]  }
  0xd0   :  { %2057 = vmatprep.subr.bf16.mxu0 %v3107_v36  ;;  %2097 = vmatpush1.bf16.msra.mxu1 %v3102_v37  ;;  %v3191_v36 = vld [vmem:[#allocation6 + $0x654] ss:$8 sps:$4 sm:$0xff]   ;;  %v3186_v37 = vld [vmem:[#allocation6 + $0x760] ss:$8 sps:$4 sm:$0xff]  }
  0xd1   :  { %2098 = vmatprep.subr.bf16.mxu1 %v3110_v38  ;;  %v3189_v38 = vld [vmem:[#allocation6 + $0x650] ss:$8 sps:$4 sm:$0xff]  }
  0xd3   :  { %2058 = vmatpush1.bf16.msra.mxu0 %v3105_v39  ;;  %v3194_v39 = vld [vmem:[#allocation6 + $0x754] ss:$8 sps:$4 sm:$0xff]  }
  0xd4   :  { %2059 = vmatprep.subr.bf16.mxu0 %v3113_v40  ;;  %2099 = vmatpush1.bf16.msra.mxu1 %v3108_v41  ;;  %v3192_v40 = vld [vmem:[#allocation6 + $0x750] ss:$8 sps:$4 sm:$0xff]   ;;  %v3197_v41 = vld [vmem:[#allocation6 + $0x644] ss:$8 sps:$4 sm:$0xff]  }
  0xd5   :  { %2100 = vmatprep.subr.bf16.mxu1 %v3116_v42  ;;  %v3200_v42 = vld [vmem:[#allocation6 + $0x744] ss:$8 sps:$4 sm:$0xff]  }
  0xd7   :  { %2060 = vmatpush1.bf16.msra.mxu0 %v3111_v43  ;;  %v3195_v43 = vld [vmem:[#allocation6 + $0x640] ss:$8 sps:$4 sm:$0xff]  }
  0xd8   :  { %2061 = vmatprep.subr.bf16.mxu0 %v3119_v44  ;;  %2101 = vmatpush1.bf16.msra.mxu1 %v3114_v45  ;;  %v3203_v44 = vld [vmem:[#allocation6 + $0x634] ss:$8 sps:$4 sm:$0xff]   ;;  %v3198_v45 = vld [vmem:[#allocation6 + $0x740] ss:$8 sps:$4 sm:$0xff]  }
  0xd9   :  { %2102 = vmatprep.subr.bf16.mxu1 %v3122_v46  ;;  %v3206_v46 = vld [vmem:[#allocation6 + $0x734] ss:$8 sps:$4 sm:$0xff]  }
  0xdb   :  { %2062 = vmatpush1.bf16.msra.mxu0 %v3117_v47  ;;  %v3201_v47 = vld [vmem:[#allocation6 + $0x630] ss:$8 sps:$4 sm:$0xff]  }
  0xdc   :  { %2063 = vmatprep.subr.bf16.mxu0 %v3125_v48  ;;  %2103 = vmatpush1.bf16.msra.mxu1 %v3120_v49  ;;  %v3209_v48 = vld [vmem:[#allocation6 + $0x624] ss:$8 sps:$4 sm:$0xff]   ;;  %v3204_v49 = vld [vmem:[#allocation6 + $0x730] ss:$8 sps:$4 sm:$0xff]  }
  0xdd   :  { %2104 = vmatprep.subr.bf16.mxu1 %v3128_v50  ;;  %v3212_v50 = vld [vmem:[#allocation6 + $0x724] ss:$8 sps:$4 sm:$0xff]  }
  0xdf   :  { %2064 = vmatpush1.bf16.msra.mxu0 %v3123_v51  ;;  %v3207_v51 = vld [vmem:[#allocation6 + $0x620] ss:$8 sps:$4 sm:$0xff]  }
  0xe0   :  { %2065 = vmatprep.subr.bf16.mxu0 %v3131_v52  ;;  %2105 = vmatpush1.bf16.msra.mxu1 %v3126_v53  ;;  %v3215_v52 = vld [vmem:[#allocation6 + $0x614] ss:$8 sps:$4 sm:$0xff]   ;;  %v3210_v53 = vld [vmem:[#allocation6 + $0x720] ss:$8 sps:$4 sm:$0xff]  }
  0xe1   :  { %2106 = vmatprep.subr.bf16.mxu1 %v3134_v54  ;;  %v3218_v54 = vld [vmem:[#allocation6 + $0x714] ss:$8 sps:$4 sm:$0xff]  }
  0xe3   :  { %2066 = vmatpush2.bf16.msra.mxu0 %v3129_v55  ;;  %v3213_v55 = vld [vmem:[#allocation6 + $0x610] ss:$8 sps:$4 sm:$0xff]  }
  0xe4   :  { %2067 = vmatprep.subr.bf16.mxu0 %v3137_v56  ;;  %2107 = vmatpush2.bf16.msra.mxu1 %v3132_v57  ;;  %v3221_v56 = vld [vmem:[#allocation6 + $0x604] ss:$8 sps:$4 sm:$0xff]   ;;  %v3216_v57 = vld [vmem:[#allocation6 + $0x710] ss:$8 sps:$4 sm:$0xff]  }
  0xe5   :  { %2108 = vmatprep.subr.bf16.mxu1 %v3140_v58  ;;  %v3224_v58 = vld [vmem:[#allocation6 + $0x704] ss:$8 sps:$4 sm:$0xff]  }
  0xe7   :  { %2068 = vmatpush2.bf16.msra.mxu0 %v3135_v59  ;;  %v3219_v59 = vld [vmem:[#allocation6 + $0x600] ss:$8 sps:$4 sm:$0xff]  }
  0xe8   :  { %2069 = vmatprep.subr.bf16.mxu0 %v3143_v60  ;;  %2109 = vmatpush2.bf16.msra.mxu1 %v3138_v61  ;;  %v3227_v60 = vld [vmem:[#allocation6 + $0x6f4] ss:$8 sps:$4 sm:$0xff]   ;;  %v3222_v61 = vld [vmem:[#allocation6 + $0x700] ss:$8 sps:$4 sm:$0xff]  }
  0xe9   :  { %2110 = vmatprep.subr.bf16.mxu1 %v3146_v62  ;;  %v3230_v62 = vld [vmem:[#allocation6 + $0x7f4] ss:$8 sps:$4 sm:$0xff]  }
  0xeb   :  { %2070 = vmatpush2.bf16.msra.mxu0 %v3141_v63  ;;  %v3225_v63 = vld [vmem:[#allocation6 + $0x6f0] ss:$8 sps:$4 sm:$0xff]  }
  0xec   :  { %2071 = vmatprep.subr.bf16.mxu0 %v3149_v0  ;;  %2111 = vmatpush2.bf16.msra.mxu1 %v3144_v1  ;;  %v3233_v0 = vld [vmem:[#allocation6 + $0x6e4] ss:$8 sps:$4 sm:$0xff]   ;;  %v3228_v1 = vld [vmem:[#allocation6 + $0x7f0] ss:$8 sps:$4 sm:$0xff]  }
  0xed   :  { %2112 = vmatprep.subr.bf16.mxu1 %v3152_v2  ;;  %v3236_v2 = vld [vmem:[#allocation6 + $0x7e4] ss:$8 sps:$4 sm:$0xff]  }
  0xef   :  { %2072 = vmatpush2.bf16.msra.mxu0 %v3147_v3  ;;  %v3231_v3 = vld [vmem:[#allocation6 + $0x6e0] ss:$8 sps:$4 sm:$0xff]  }
  0xf0   :  { %2073 = vmatprep.subr.bf16.mxu0 %v3155_v4  ;;  %2113 = vmatpush2.bf16.msra.mxu1 %v3150_v5  ;;  %v3239_v4 = vld [vmem:[#allocation6 + $0x6d4] ss:$8 sps:$4 sm:$0xff]   ;;  %v3234_v5 = vld [vmem:[#allocation6 + $0x7e0] ss:$8 sps:$4 sm:$0xff]  }
  0xf1   :  { %2114 = vmatprep.subr.bf16.mxu1 %v3158_v6  ;;  %v3242_v6 = vld [vmem:[#allocation6 + $0x7d4] ss:$8 sps:$4 sm:$0xff]  }
  0xf3   :  { %2074 = vmatpush2.bf16.msra.mxu0 %v3153_v7  ;;  %v3237_v7 = vld [vmem:[#allocation6 + $0x6d0] ss:$8 sps:$4 sm:$0xff]  }
  0xf4   :  { %2075 = vmatprep.subr.bf16.mxu0 %v3161_v8  ;;  %2115 = vmatpush2.bf16.msra.mxu1 %v3156_v9  ;;  %v3245_v8 = vld [vmem:[#allocation6 + $0x6c4] ss:$8 sps:$4 sm:$0xff]   ;;  %v3240_v9 = vld [vmem:[#allocation6 + $0x7d0] ss:$8 sps:$4 sm:$0xff]  }
  0xf5   :  { %2116 = vmatprep.subr.bf16.mxu1 %v3164_v10  ;;  %v3248_v10 = vld [vmem:[#allocation6 + $0x7c4] ss:$8 sps:$4 sm:$0xff]  }
  0xf7   :  { %2076 = vmatpush2.bf16.msra.mxu0 %v3159_v11  ;;  %v3243_v11 = vld [vmem:[#allocation6 + $0x6c0] ss:$8 sps:$4 sm:$0xff]  }
  0xf8   :  { %2077 = vmatprep.subr.bf16.mxu0 %v3167_v12  ;;  %2117 = vmatpush2.bf16.msra.mxu1 %v3162_v13  ;;  %v3251_v12 = vld [vmem:[#allocation6 + $0x6b4] ss:$8 sps:$4 sm:$0xff]   ;;  %v3246_v13 = vld [vmem:[#allocation6 + $0x7c0] ss:$8 sps:$4 sm:$0xff]  }
  0xf9   :  { %2118 = vmatprep.subr.bf16.mxu1 %v3170_v14  ;;  %v3254_v14 = vld [vmem:[#allocation6 + $0x7b4] ss:$8 sps:$4 sm:$0xff]  }
  0xfb   :  { %2078 = vmatpush2.bf16.msra.mxu0 %v3165_v15  ;;  %v3249_v15 = vld [vmem:[#allocation6 + $0x6b0] ss:$8 sps:$4 sm:$0xff]  }
  0xfc   :  { %2079 = vmatprep.subr.bf16.mxu0 %v3173_v16  ;;  %2119 = vmatpush2.bf16.msra.mxu1 %v3168_v17  ;;  %v3257_v16 = vld [vmem:[#allocation6 + $0x6a4] ss:$8 sps:$4 sm:$0xff]   ;;  %v3252_v17 = vld [vmem:[#allocation6 + $0x7b0] ss:$8 sps:$4 sm:$0xff]  }
  0xfd   :  { %2120 = vmatprep.subr.bf16.mxu1 %v3176_v19  ;;  %v3255_v19 = vld [vmem:[#allocation6 + $0x6a0] ss:$8 sps:$4 sm:$0xff]  }
  0xff   :  { %2080 = vmatpush2.bf16.msra.mxu0 %v3171_v18  ;;  %v3260_v18 = vld [vmem:[#allocation6 + $0x7a4] ss:$8 sps:$4 sm:$0xff]  }
 0x100   :  { %2131 = vmatprep.subr.bf16.mxu0 %v3179_v21  ;;  %2121 = vmatpush2.bf16.msra.mxu1 %v3174_v23  ;;  %v3263_v21 = vld [vmem:[#allocation6 + $0x694] ss:$8 sps:$4 sm:$0xff]  }
 0x101   :  { %2172 = vmatprep.subr.bf16.mxu1 %v3182_v26  ;;  %v3266_v23 = vld [vmem:[#allocation6 + $0x794] ss:$8 sps:$4 sm:$0xff]   ;;  %v3269_v26 = vld [vmem:[#allocation6 + $0x684] ss:$8 sps:$4 sm:$0xff]  }
 0x102   :  { %2082 = vmatmul.mubr.bf16.vlgmr.msra.gmra.mxu0 %v117_v25  ;;  %v420_v25 = vshrl.u32 %v419_v20, 7  ;;  %v3306_v20 = vld [vmem:[#allocation6 + $0x8c0] ss:$8 sps:$4 sm:$0xff]  }
 0x103   :  { %2132 = vmatpush1.bf16.msra.mxu0 %v3177_v28  ;;  %2163 = vmatprep.mubr.bf16.mxu0 %v122_v29  ;;  %v3272_v28 = vld [vmem:[#allocation6 + $0x784] ss:$8 sps:$4 sm:$0xff]   ;;  %v3267_v29 = vld [vmem:[#allocation6 + $0x680] ss:$8 sps:$4 sm:$0xff]  }
 0x104   :  { %2123 = vmatmul.mubr.bf16.vlgmr.msra.gmra.mxu1 %v119_v30  ;;  %2133 = vmatprep.subr.bf16.mxu0 %v3185_v31  ;;  %v421_v30 = vsub.s32 0, %v420_v25  ;;  %v102_v31 = vld [vmem:[#allocation3 + $0x60] sm:$0xff] }
 0x105   :  { %2173 = vmatpush1.bf16.msra.mxu1 %v3180_v32  ;;  %2204 = vmatprep.mubr.bf16.mxu1 %v124_v33  ;;  %v416_v32 = vld [vmem:[#allocation6 + $0x900] sm:$0x77]  ;;  %v417_v33 = vld [vmem:[#allocation8] sm:$0x3] }
 0x106   :  { %2174 = vmatprep.subr.bf16.mxu1 %v3188_v34  ;;  %v3275_v34 = vld [vmem:[#allocation6 + $0x874] ss:$8 sps:$4 sm:$0xff]  }
 0x107   :  { %2134 = vmatpush1.bf16.msra.mxu0 %v3183_v35  ;;  %v107_v35 = vld [vmem:[#allocation3 + $0x88] sm:$0xff] }
 0x108   :  { %2135 = vmatprep.subr.bf16.mxu0 %v3191_v36  ;;  %v3270_v36 = vld [vmem:[#allocation6 + $0x780] ss:$8 sps:$4 sm:$0xff]  }
 0x109   :  { %2175 = vmatpush1.bf16.msra.mxu1 %v3186_v37  ;;  %v425_v37 = vsub.s32 1, %v420_v25  ;;  %v3317_v25 = vld [vmem:[#allocation6 + $0x894] ss:$8 sps:$4 sm:$0xff]  }
 0x10a   :  { %2176 = vmatprep.subr.bf16.mxu1 %v3194_v39  ;;  %v121_v39 = vpack.c.bf16 %v102_v31, %v102_v31 }
 0x10b   :  { %2136 = vmatpush1.bf16.msra.mxu0 %v3189_v38  ;;  %v104_v38 = vld [vmem:[#allocation3 + $0x70] sm:$0xff] }
 0x10c   :  { %2137 = vmatprep.subr.bf16.mxu0 %v3197_v41  ;;  %v2834_v41 = vcombine.low %v416_v32, %v416_v32 }
 0x10d   :  { %2177 = vmatpush1.bf16.msra.mxu1 %v3192_v40  ;;  %v2835_v40 = vcombine.high %v416_v32, %v416_v32 }
 0x10e   :  { %2178 = vmatprep.subr.bf16.mxu1 %v3200_v42  ;;  %v422_v42 = vrot.slane %v417_v33, %v421_v30 }
 0x10f   :  { %2138 = vmatpush1.bf16.msra.mxu0 %v3195_v43  ;;  %v3273_v43 = vld [vmem:[#allocation6 + $0x870] ss:$8 sps:$4 sm:$0xff]  }
 0x110   :  { %2139 = vmatprep.subr.bf16.mxu0 %v3203_v44  ;;  %v126_v44 = vpack.c.bf16 %v107_v35, %v107_v35 }
 0x111   :  { %2179 = vmatpush1.bf16.msra.mxu1 %v3198_v45  ;;  %v123_v45 = vpack.c.bf16 %v104_v38, %v104_v38 }
 0x112   :  { %2180 = vmatprep.subr.bf16.mxu1 %v3206_v46  ;;  %v3278_v46 = vld [vmem:[#allocation6 + $0x864] ss:$8 sps:$4 sm:$0xff]  }
 0x113   :  { %2140 = vmatpush1.bf16.msra.mxu0 %v3201_v47  ;;  %v426_v47 = vrot.slane %v417_v33, %v425_v37 }
 0x114   :  { %2141 = vmatprep.subr.bf16.mxu0 %v3209_v48 }
 0x115   :  { %2181 = vmatpush1.bf16.msra.mxu1 %v3204_v49  ;;  %v1880_v49 = vsel %vm1878_vm0, %v2834_v41, 0 }
 0x116   :  { %2182 = vmatprep.subr.bf16.mxu1 %v3212_v50 }
 0x117   :  { %2142 = vmatpush1.bf16.msra.mxu0 %v3207_v51  ;;  %v3276_v51 = vld [vmem:[#allocation6 + $0x860] ss:$8 sps:$4 sm:$0xff]  }
 0x118   :  { %2143 = vmatprep.subr.bf16.mxu0 %v3215_v52 }
 0x119   :  { %2183 = vmatpush1.bf16.msra.mxu1 %v3210_v53 }
 0x11a   :  { %2184 = vmatprep.subr.bf16.mxu1 %v3218_v54  ;;  %v3281_v54 = vld [vmem:[#allocation6 + $0x854] ss:$8 sps:$4 sm:$0xff]  }
 0x11b   :  { %2144 = vmatpush1.bf16.msra.mxu0 %v3213_v55 }
 0x11c   :  { %2145 = vmatprep.subr.bf16.mxu0 %v3221_v56 }
 0x11d   :  { %2185 = vmatpush1.bf16.msra.mxu1 %v3216_v57  ;;  %v3474_v57 = vmov 0  }
 0x11e   :  { %2186 = vmatprep.subr.bf16.mxu1 %v3224_v58  ;;  %v108_v58 = vld [vmem:[#allocation3 + $0x90] sm:$0xff] }
 0x11f   :  { %2146 = vmatpush1.bf16.msra.mxu0 %v3219_v59 }
 0x120   :  { %2147 = vmatprep.subr.bf16.mxu0 %v3227_v60 }
 0x121   :  { %2187 = vmatpush1.bf16.msra.mxu1 %v3222_v61 }
 0x122   :  { %2188 = vmatprep.subr.bf16.mxu1 %v3230_v62  ;;  %v3279_v62 = vld [vmem:[#allocation6 + $0x850] ss:$8 sps:$4 sm:$0xff]  }
 0x123   :  { %2148 = vmatpush2.bf16.msra.mxu0 %v3225_v63 }
 0x124   :  { %2149 = vmatprep.subr.bf16.mxu0 %v3233_v0  ;;  %v3284_v0 = vld [vmem:[#allocation6 + $0x844] ss:$8 sps:$4 sm:$0xff]  }
 0x125   :  { %2189 = vmatpush2.bf16.msra.mxu1 %v3228_v1 }
 0x126   :  { %2190 = vmatprep.subr.bf16.mxu1 %v3236_v2  ;;  %v127_v2 = vpack.c.bf16 %v108_v58, %v108_v58 }
 0x127   :  { %2150 = vmatpush2.bf16.msra.mxu0 %v3231_v3 }
 0x128   :  { %2151 = vmatprep.subr.bf16.mxu0 %v3239_v4  ;;  %v3282_v4 = vld [vmem:[#allocation6 + $0x840] ss:$8 sps:$4 sm:$0xff]  }
 0x129   :  { %2191 = vmatpush2.bf16.msra.mxu1 %v3234_v5  ;;  %v3287_v5 = vld [vmem:[#allocation6 + $0x834] ss:$8 sps:$4 sm:$0xff]  }
 0x12a   :  { %2192 = vmatprep.subr.bf16.mxu1 %v3242_v6  ;;  %v3285_v6 = vld [vmem:[#allocation6 + $0x830] ss:$8 sps:$4 sm:$0xff]  }
 0x12b   :  { %2152 = vmatpush2.bf16.msra.mxu0 %v3237_v7  ;;  %v3290_v7 = vld [vmem:[#allocation6 + $0x824] ss:$8 sps:$4 sm:$0xff]  }
 0x12c   :  { %2153 = vmatprep.subr.bf16.mxu0 %v3245_v8  ;;  %v3288_v8 = vld [vmem:[#allocation6 + $0x820] ss:$8 sps:$4 sm:$0xff]  }
 0x12d   :  { %2193 = vmatpush2.bf16.msra.mxu1 %v3240_v9  ;;  %v3293_v9 = vld [vmem:[#allocation6 + $0x814] ss:$8 sps:$4 sm:$0xff]  }
 0x12e   :  { %2194 = vmatprep.subr.bf16.mxu1 %v3248_v10  ;;  %v3291_v10 = vld [vmem:[#allocation6 + $0x810] ss:$8 sps:$4 sm:$0xff]  }
 0x12f   :  { %2154 = vmatpush2.bf16.msra.mxu0 %v3243_v11  ;;  %v3296_v11 = vld [vmem:[#allocation6 + $0x804] ss:$8 sps:$4 sm:$0xff]  }
 0x130   :  { %2155 = vmatprep.subr.bf16.mxu0 %v3251_v12  ;;  %v3294_v12 = vld [vmem:[#allocation6 + $0x800] ss:$8 sps:$4 sm:$0xff]  }
 0x131   :  { %2195 = vmatpush2.bf16.msra.mxu1 %v3246_v13  ;;  %v3299_v13 = vld [vmem:[#allocation6 + $0x8f4] ss:$8 sps:$4 sm:$0xff]  }
 0x132   :  { %2196 = vmatprep.subr.bf16.mxu1 %v3254_v14  ;;  %v3297_v14 = vld [vmem:[#allocation6 + $0x8f0] ss:$8 sps:$4 sm:$0xff]  }
 0x133   :  { %2156 = vmatpush2.bf16.msra.mxu0 %v3249_v15  ;;  %v3302_v15 = vld [vmem:[#allocation6 + $0x8e4] ss:$8 sps:$4 sm:$0xff]  }
 0x134   :  { %2157 = vmatprep.subr.bf16.mxu0 %v3257_v16  ;;  %v3300_v16 = vld [vmem:[#allocation6 + $0x8e0] ss:$8 sps:$4 sm:$0xff]  }
 0x135   :  { %2197 = vmatpush2.bf16.msra.mxu1 %v3252_v17  ;;  %v3305_v17 = vld [vmem:[#allocation6 + $0x8d4] ss:$8 sps:$4 sm:$0xff]  }
 0x136   :  { %2198 = vmatprep.subr.bf16.mxu1 %v3260_v18  ;;  %v3303_v18 = vld [vmem:[#allocation6 + $0x8d0] ss:$8 sps:$4 sm:$0xff]  }
 0x137   :  { %2158 = vmatpush2.bf16.msra.mxu0 %v3255_v19  ;;  %v3308_v19 = vld [vmem:[#allocation6 + $0x8c4] ss:$8 sps:$4 sm:$0xff]  }
 0x138   :  { %2159 = vmatprep.subr.bf16.mxu0 %v3263_v21  ;;  %v3311_v21 = vld [vmem:[#allocation6 + $0x8b4] ss:$8 sps:$4 sm:$0xff]  }
 0x139   :  { %2199 = vmatpush2.bf16.msra.mxu1 %v3258_v22  ;;  %v3309_v22 = vld [vmem:[#allocation6 + $0x8b0] ss:$8 sps:$4 sm:$0xff]  }
 0x13a   :  { %2200 = vmatprep.subr.bf16.mxu1 %v3266_v23  ;;  %v3314_v23 = vld [vmem:[#allocation6 + $0x8a4] ss:$8 sps:$4 sm:$0xff]  }
 0x13b   :  { %2160 = vmatpush2.bf16.msra.mxu0 %v3261_v24  ;;  %v3312_v24 = vld [vmem:[#allocation6 + $0x8a0] ss:$8 sps:$4 sm:$0xff]  }
 0x13c   :  { %2161 = vmatprep.subr.bf16.mxu0 %v3269_v26  ;;  %v3315_v26 = vld [vmem:[#allocation6 + $0x890] ss:$8 sps:$4 sm:$0xff]  }
 0x13d   :  { %2201 = vmatpush2.bf16.msra.mxu1 %v3264_v27  ;;  %v3322_v27 = vld [vmem:[#allocation6 + $0x884] ss:$8 sps:$4 sm:$0xff]  }
 0x13e   :  { %2202 = vmatprep.subr.bf16.mxu1 %v3272_v28  ;;  %v3320_v28 = vld [vmem:[#allocation6 + $0x880] ss:$8 sps:$4 sm:$0xff]  }
 0x13f   :  { %2162 = vmatpush2.bf16.msra.mxu0 %v3267_v29  ;;  %v106_v29 = vld [vmem:[#allocation3 + $0x80] sm:$0xff] }
 0x140   :  { %2213 = vmatprep.subr.bf16.mxu0 %v3275_v34  ;;  %v125_v30 = vpack.c.bf16 %v106_v29, %v106_v29 }
 0x141   :  { %2203 = vmatpush2.bf16.msra.mxu1 %v3270_v36 }
 0x142   :  { %v1919_v48 = vpop.f32.mrf.mxu0  ;;  %2164 = vmatmul.mubr.bf16.vlgmr.msra.gmra.mxu0 %v121_v39  ;;  %2836 = vmatprep.subr.msk.bf16.mxu1 %vm1878_vm0, %v2835_v40 }
 0x143   :  { %v1920_v50 = vadd.f32 %v1919_v48, %v422_v42  ;;  %2214 = vmatpush1.bf16.msra.mxu0 %v3273_v43  ;;  %2245 = vmatprep.mubr.bf16.mxu0 %v126_v44  ;;  %v1960_v53 = vpop.f32.mrf.mxu1  ;;  %v3323_v42 = vld [vmem:[%s3594_s3 + $0x78] sm:$0xff]   ;;  %v3325_v44 = vld [vmem:[%s3594_s3 + $0x70] sm:$0xff]   ;;  %v3328_v48 = vld [vmem:[%s3594_s3 + $0x28] sm:$0xff]  }
 0x144   :  { %v1921_v52 = vpop.f32.mrf.mxu0  ;;  %2205 = vmatmul.mubr.bf16.vlgmr.msra.gmra.mxu1 %v123_v45  ;;  %2215 = vmatprep.subr.bf16.mxu0 %v3278_v46  ;;  %v3324_v43 = vld [vmem:[%s3594_s3 + $0x38] sm:$0xff]   ;;  %v3326_v46 = vld [vmem:[%s3594_s3 + $0x30] sm:$0xff]  }
 0x145   :  { %v1922_v55 = vadd.f32 %v1921_v52, %v426_v47  ;;  %v3534_v56 = vadd.f32 %v1960_v53, %v1920_v50  ;;  %2269 = vmatpush1.bf16.msra.mxu1 %v1880_v49  ;;  %2286 = vmatprep.mubr.bf16.mxu1 %v3474_v57  ;;  %v1962_v60 = vpop.f32.mrf.mxu1  ;;  %v3327_v47 = vld [vmem:[%s3594_s3 + $0x68] sm:$0xff]   ;;  %v3329_v49 = vld [vmem:[%s3594_s3 + $0x60] sm:$0xff]   ;;  %v3332_v52 = vld [vmem:[%s3594_s3 + $0x18] sm:$0xff]  }
 0x146   :  { %v1923_v59 = vpop.f32.mrf.mxu0  ;;  %2857 = vmatprep.subr.bf16.mxu1 %v3323_v42  ;;  %v3330_v50 = vld [vmem:[%s3594_s3 + $0x20] sm:$0xff]   ;;  %v3333_v53 = vld [vmem:[%s3594_s3 + $0x50] sm:$0xff]  }
 0x147   :  { %v3536_v61 = vadd.f32 %v1962_v60, %v1922_v55  ;;  %2216 = vmatpush1.bf16.msra.mxu0 %v3276_v51  ;;  %v1964_v1 = vpop.f32.mrf.mxu1  ;;  %v3331_v51 = vld [vmem:[%s3594_s3 + $0x58] sm:$0xff]   ;;  %v3335_v59 = vld [vmem:[%s3594_s3 + $0x48] sm:$0xff]   ;;  %v2855_v42 = vld [vmem:[#allocation11] ss:$0 sm:$0xff] }
 0x148   :  { %v1924_v63 = vpop.f32.mrf.mxu0  ;;  %2217 = vmatprep.subr.bf16.mxu0 %v3281_v54  ;;  %v3334_v54 = vld [vmem:[%s3594_s3 + $0x10] sm:$0xff]  }
 0x149   :  { %v1965_v3 = vpop.f32.mrf.mxu1 }
 0x14b   :  { %2218 = vmatpush1.bf16.msra.mxu0 %v3279_v62  ;;  %v3336_v62 = vld [vmem:[%s3594_s3 + $0x8] sm:$0xff]  }
 0x14c   :  { %2219 = vmatprep.subr.bf16.mxu0 %v3284_v0  ;;  %2837 = vmatmul.mubr.msk.bf16.vlgmr.msra.gmra.mxu1 %vm1874_vm1, %v127_v2 }
 0x14d   :  { %2858 = vmatpush3.bf16.msra.mxu1 %v3324_v43 }
 0x14e   :  { %2859 = vmatprep.subr.bf16.mxu1 %v3325_v44 }
 0x14f   :  { %2220 = vmatpush1.bf16.msra.mxu0 %v3282_v4  ;;  %v3337_v4 = vld [vmem:[%s3594_s3 + $0x40] sm:$0xff]  }
 0x150   :  { %2221 = vmatprep.subr.bf16.mxu0 %v3287_v5  ;;  %v3338_v5 = vld [vmem:[%s3594_s3] sm:$0xff]   ;;  %s3475_s3 = smov [#allocation12]  }
 0x151   :  { %2860 = vmatpush3.bf16.msra.mxu1 %v3326_v46  ;;  %v2856_v46 = vld [vmem:[#allocation2] ss:$0 sm:$0xff]  ;;  %s2535_s29 = sshll.u32 %s3475_s3, 4  ;;  %s2536_s29 = int_to_ptr.vmem [resolvable:$true] %s2535_s29 }
 0x152   :  { %2861 = vmatprep.subr.bf16.mxu1 %v3327_v47  ;;  %s3439_s30 = scalar_lea.vmem %s2536_s29, 16  ;;  %s3443_s8 = scalar_lea.vmem %s2536_s29, 32 }
 0x153   :  { %2222 = vmatpush1.bf16.msra.mxu0 %v3285_v6  ;;  %p3440_p11 = scmp.ne.s32.totalorder %s2536_s29, %s3439_s30  ;;  %p3444_p12 = scmp.lt.s32.totalorder %s2536_s29, %s2536_s29 }
 0x154   :  { %2223 = vmatprep.subr.bf16.mxu0 %v3290_v7  ;;  %p3445_p13 = scmp.lt.s32.totalorder %s3443_s8, %s3439_s30 }
 0x155   :  { %2862 = vmatpush3.bf16.msra.mxu1 %v3328_v48 }
 0x156   :  { %2863 = vmatprep.subr.bf16.mxu1 %v3329_v49  ;;  %p3446_p0 = por %p3445_p13, %p3444_p12 }
 0x157   :  { %2224 = vmatpush1.bf16.msra.mxu0 %v3288_v8 }
 0x158   :  { %2225 = vmatprep.subr.bf16.mxu0 %v3293_v9  ;;  %p3447_p1 = pnand %p3446_p0, %p3440_p11 }
 0x159   :  { %2864 = vmatpush3.bf16.msra.mxu1 %v3330_v50 }
 0x15a   :  { %2865 = vmatprep.subr.bf16.mxu1 %v3331_v51 }
 0x15b   :  { %2226 = vmatpush1.bf16.msra.mxu0 %v3291_v10 }
 0x15c   :  { %2227 = vmatprep.subr.bf16.mxu0 %v3296_v11 }
 0x15d   :  { %2866 = vmatpush3.bf16.msra.mxu1 %v3332_v52 }
 0x15e   :  { %2867 = vmatprep.subr.bf16.mxu1 %v3333_v53 }
 0x15f   :  { %2228 = vmatpush1.bf16.msra.mxu0 %v3294_v12 }
 0x160   :  { %2229 = vmatprep.subr.bf16.mxu0 %v3299_v13 }
 0x161   :  { %2868 = vmatpush3.bf16.msra.mxu1 %v3334_v54 }
 0x162   :  { %2869 = vmatprep.subr.bf16.mxu1 %v3335_v59 }
 0x163   :  { %2230 = vmatpush2.bf16.msra.mxu0 %v3297_v14 }
 0x164   :  { %2231 = vmatprep.subr.bf16.mxu0 %v3302_v15 }
 0x165   :  { %2870 = vmatpush3.bf16.msra.mxu1 %v3336_v62 }
 0x166   :  { %2871 = vmatprep.subr.bf16.mxu1 %v3337_v4 }
 0x167   :  { %2232 = vmatpush2.bf16.msra.mxu0 %v3300_v16 }
 0x168   :  { %2233 = vmatprep.subr.bf16.mxu0 %v3305_v17 }
 0x169   :  { %2872 = vmatpush3.bf16.msra.mxu1 %v3338_v5 }
 0x16b   :  { %2234 = vmatpush2.bf16.msra.mxu0 %v3303_v18 }
 0x16c   :  { %2235 = vmatprep.subr.bf16.mxu0 %v3308_v19 }
 0x16f   :  { %2236 = vmatpush2.bf16.msra.mxu0 %v3306_v20 }
 0x170   :  { %2237 = vmatprep.subr.bf16.mxu0 %v3311_v21 }
 0x173   :  { %2238 = vmatpush2.bf16.msra.mxu0 %v3309_v22 }
 0x174   :  { %2239 = vmatprep.subr.bf16.mxu0 %v3314_v23 }
 0x177   :  { %2240 = vmatpush2.bf16.msra.mxu0 %v3312_v24 }
 0x178   :  { %2241 = vmatprep.subr.bf16.mxu0 %v3317_v25 }
 0x17b   :  { %2242 = vmatpush2.bf16.msra.mxu0 %v3315_v26 }
 0x17c   :  { %2243 = vmatprep.subr.bf16.mxu0 %v3322_v27 }
 0x17f   :  { %2244 = vmatpush2.bf16.msra.mxu0 %v3320_v28 }
 0x182   :  { %v2001_v31 = vpop.f32.mrf.mxu0  ;;  %2246 = vmatmul.mubr.bf16.vlgmr.msra.gmra.mxu0 %v125_v30 }
 0x183   :  { %v2002_v32 = vadd.f32 %v2001_v31, %v3534_v56  ;;  %v2042_v34 = vpop.f32.mrf.mxu1 }
 0x184   :  { %v2003_v33 = vpop.f32.mrf.mxu0 }
 0x185   :  { %v2004_v35 = vadd.f32 %v2003_v33, %v3536_v61  ;;  %v2043_v36 = vadd.f32 %v2042_v34, %v2002_v32  ;;  %v2044_v38 = vpop.f32.mrf.mxu1 }
 0x186   :  { %v2005_v37 = vpop.f32.mrf.mxu0 }
 0x187   :  { %v2045_v39 = vadd.f32 %v2044_v38, %v2004_v35  ;;  %v2046_v41 = vpop.f32.mrf.mxu1 }
 0x188   :  { %v2006_v40 = vpop.f32.mrf.mxu0 }
 0x189   :  { %v2047_v45 = vpop.f32.mrf.mxu1 }
 0x1c2   :  { %v2083_v55 = vpop.f32.mrf.mxu0 }
 0x1c3   :  { %v2084_v56 = vadd.f32 %v2083_v55, %v2043_v36  ;;  %v2838_v36 = vld [vmem:[#allocation9] ss:$0 sm:$0xff] }
 0x1c4   :  { %v2085_v57 = vpop.f32.mrf.mxu0  ;;  %v2124_v58 = vpop.f32.mrf.mxu1 }
 0x1c5   :  { %v2086_v60 = vadd.f32 %v2085_v57, %v2045_v39  ;;  %v2125_v61 = vadd.f32 %v2124_v58, %v2084_v56 }
 0x1c6   :  { %v2087_v63 = vpop.f32.mrf.mxu0  ;;  %v2126_v0 = vpop.f32.mrf.mxu1 }
 0x1c7   :  { %v2127_v1 = vadd.f32 %v2126_v0, %v2086_v60 }
 0x1c8   :  { %v2088_v2 = vpop.f32.mrf.mxu0  ;;  %v2128_v3 = vpop.f32.mrf.mxu1 }
 0x1ca   :  { %v2129_v6 = vpop.f32.mrf.mxu1 }
 0x202   :  { %v2165_v7 = vpop.f32.mrf.mxu0 }
 0x203   :  { %v2166_v19 = vadd.f32 %v2165_v7, %v2125_v61 }
 0x204   :  { %v2167_v8 = vpop.f32.mrf.mxu0  ;;  %v2206_v9 = vpop.f32.mrf.mxu1 }
 0x205   :  { %v2168_v20 = vadd.f32 %v2167_v8, %v2127_v1  ;;  %v2207_v21 = vadd.f32 %v2206_v9, %v2166_v19 }
 0x206   :  { %v2169_v10 = vpop.f32.mrf.mxu0  ;;  %v2208_v11 = vpop.f32.mrf.mxu1 }
 0x207   :  { %v2209_v23 = vadd.f32 %v2208_v11, %v2168_v20 }
 0x208   :  { %v2170_v12 = vpop.f32.mrf.mxu0  ;;  %v2210_v13 = vpop.f32.mrf.mxu1 }
 0x20a   :  { %v2211_v14 = vpop.f32.mrf.mxu1 }
 0x20c   :  { %v2288_v15 = vpop.f32.mrf.mxu1 }
 0x20e   :  { %v2290_v16 = vpop.f32.mrf.mxu1 }
 0x210   :  { %v2292_v17 = vpop.f32.mrf.mxu1 }
 0x212   :  { %v2293_v18 = vpop.f32.mrf.mxu1 }
 0x242   :  { %v2247_v22 = vpop.f32.mrf.mxu0 }
 0x243   :  { %v2248_v24 = vadd.f32 %v2247_v22, %v2207_v21 }
 0x244   :  { %v2249_v25 = vpop.f32.mrf.mxu0 }
 0x245   :  { %v2289_v26 = vadd.f32 %v2288_v15, %v2248_v24  ;;  %v2250_v27 = vadd.f32 %v2249_v25, %v2209_v23 }
 0x246   :  { %v2251_v28 = vpop.f32.mrf.mxu0 }
 0x247   :  { %v2291_v29 = vadd.f32 %v2290_v16, %v2250_v27  ;;  %v2295_v30 = vmax.f32 %v2289_v26, 0.0 }
 0x248   :  { %v2252_v31 = vpop.f32.mrf.mxu0 }
 0x249   :  { %v2296_v32 = vmax.f32 %v2291_v29, 0.0  ;;  %v2297_v34 = vpack.c.bf16 %v2295_v30, %v2295_v30 }
 0x24b   :  { %v2298_v33 = vpack.c.bf16 %v2296_v32, %v2296_v32 }
 0x24d   :  { %2466 = vmatprep.mubr.bf16.mxu1 %v2298_v33 }
 0x24e   :  { %2467 = vmatmul.mubr.bf16.vlgmr.msra.gmra.mxu1 %v2297_v34 }
 0x30e   :  { %v2873_v35 = vpop.f32.mrf.mxu1 }
 0x310   :  { %v2874_v37 = vpop.f32.mrf.mxu1 }
 0x311   :  { %v2875_v38 = vadd.f32 %v2874_v37, %v2873_v35 }
 0x312   :  { %v2876_v39 = vpop.f32.mrf.mxu1 }
 0x313   :  { %v2469_v40 = vadd.f32 %v2875_v38, %v2838_v36 }
 0x314   :  { %v2877_v41 = vpop.f32.mrf.mxu1 }
 0x315   :  { %v2474_v43 = vmax.f32 %v2469_v40, 0.0 }
 0x317   :  { %v2482_v44 = vmul.f32 %v2855_v42, %v2474_v43 }
 0x319   :  { %v2484_v45 = vsel %vm2483_vm2, %v2482_v44, 0.0 }
 0x31a   :  { %2485 = vadd.xlane.f32.xlu0 %v2484_v45 }
 0x3a3   :  { %v2486_v47 = vpop.xlane.xlu0 %2485 }
 0x3a4   :  { %v2494_v48 = vadd.f32 %v2856_v46, %v2486_v47 }
 0x3a6   :  { %2495 = vxpose.xlu0.b32.start.end [1/1] (short) (narrow) %v2494_v48, 8 }
 0x422   :  { %v2511_v49 = vpop.trf.xlu0 }
 0x423   :  { %2528 = vst.msk [vmem:[#allocation12] sm:$0x1] %vm2527_vm3, %v2511_v49 }
 0x424   :  { %3450 = shalt.err (!%p3447_p1)
}
 0x425   :  { %2538 = dma.vmem_to_hbm [thread:$0]  %s2536_s29, 16, %s3598_s7, [#allocation5]  }
 0x426   :  { %3465 = dma.done.wait [#allocation5], 16  }
 0x427   :  { %3466 = vsyncadd [#allocation5], 4294967280 }
 0x428   :  { %2542 = vsyncpa [#allocation4], 1 }
 0x429   :  { %2543 = vsyncpa [#allocation7], 1 }
 0x42a   :  { %2544 = vsyncpa [#allocation10], 1 }
 0x42b   :  { %2545 = vsyncpa [#allocation5], 1 }

</bundles_post_ra>
